<compile_context>
chip_gen: v7x
topology: tpu7x:2x2x1
jax: 0.10.0
libtpu: 0.0.40
codegen_flags: <defaults>
</compile_context>

<pallas_src>
import jax
import jax.numpy as jnp
from jax.experimental import pallas as pl
from jax.experimental.pallas import tpu as pltpu


def gcn_classifier_kernel(x_ref, k1_ref, b1_ref, k2_ref, b2_ref,
                          pool_ref, tavg_ref, wc_ref, bc_ref, out_ref):
    # x_ref: (B*T, N*F) -- one row per (b, t) frame, node-features flattened.
    x = x_ref[...]

    # Layer 1: relu( (adj @ x_bt) @ W1 + b1 ), folded into one dense matmul.
    h = jnp.dot(x, k1_ref[...], preferred_element_type=jnp.float32) + b1_ref[...]
    h = jnp.maximum(h, 0.0)                                          # (B*T, N*H)

    # Layer 2.
    h = jnp.dot(h, k2_ref[...], preferred_element_type=jnp.float32) + b2_ref[...]
    h = jnp.maximum(h, 0.0)                                          # (B*T, N*H)

    # Temporal mean (AdaptiveAvgPool1d(1)) then node mean, as two matmuls.
    h = jnp.dot(tavg_ref[...], h, preferred_element_type=jnp.float32)       # (B, N*H)
    pooled = jnp.dot(h, pool_ref[...], preferred_element_type=jnp.float32)  # (B, H)

    # Classifier; output lanes zero-padded to 128 -> lane-dense store.
    logits = (jnp.dot(pooled, wc_ref[...], preferred_element_type=jnp.float32)
              + bc_ref[...])
    out_ref[...] = logits.astype(out_ref.dtype)


def gcn_classifier_forward(x, adj, W1, b1, W2, b2, Wc, bc, *, c_pad=128):
    """x: (B, T, N, F) float32.  adj: (N, N).
    Weights in PyTorch nn.Linear layout: W*: (out, in), b*: (out,)."""
    B, T, N, F = x.shape
    H = W1.shape[0]
    C = Wc.shape[0]

    # ---- one-time parameter reshaping (pure JAX, outside the kernel) --------
    # For z laid out (N, F) row-major:  vec((adj @ z) @ W1.T) == vec(z) @ kron(adj.T, W1.T)
    k1 = jnp.kron(adj.T, W1.T)                              # (N*F, N*H)
    k2 = jnp.kron(adj.T, W2.T)                              # (N*H, N*H)
    b1t = jnp.tile(b1, N).reshape(1, N * H)                 # bias per (n, h) lane
    b2t = jnp.tile(b2, N).reshape(1, N * H)
    pool = jnp.tile(jnp.eye(H, dtype=x.dtype), (N, 1)) / N  # (N*H, H): mean over nodes
    tavg = jnp.kron(jnp.eye(B, dtype=x.dtype),
                    jnp.ones((1, T), x.dtype)) / T          # (B, B*T): mean over T
    wc_pad = jnp.zeros((H, c_pad), x.dtype).at[:, :C].set(Wc.T)
    bc_pad = jnp.zeros((1, c_pad), x.dtype).at[0, :C].set(bc)

    x_flat = x.reshape(B * T, N * F)                        # row-major flatten

    out_padded = pl.pallas_call(
        gcn_classifier_kernel,
        out_shape=jax.ShapeDtypeStruct((B, c_pad), jnp.float32),
        grid_spec=pltpu.PrefetchScalarGridSpec(
            num_scalar_prefetch=0,
            grid=(1,),
            in_specs=[
                pl.BlockSpec((B * T, N * F), lambda i: (0, 0)),   # x (flattened)
                pl.BlockSpec((N * F, N * H), lambda i: (0, 0)),   # K1 = kron(adj^T, W1^T)
                pl.BlockSpec((1, N * H), lambda i: (0, 0)),       # b1 tiled over nodes
                pl.BlockSpec((N * H, N * H), lambda i: (0, 0)),   # K2 = kron(adj^T, W2^T)
                pl.BlockSpec((1, N * H), lambda i: (0, 0)),       # b2 tiled over nodes
                pl.BlockSpec((N * H, H), lambda i: (0, 0)),       # node-mean matrix
                pl.BlockSpec((B, B * T), lambda i: (0, 0)),       # temporal-mean matrix
                pl.BlockSpec((H, c_pad), lambda i: (0, 0)),       # Wc^T padded to 128 lanes
                pl.BlockSpec((1, c_pad), lambda i: (0, 0)),       # bc padded to 128 lanes
            ],
            out_specs=pl.BlockSpec((B, c_pad), lambda i: (0, 0)),
        ),
        compiler_params=pltpu.CompilerParams(
            dimension_semantics=("arbitrary",)),
    )(x_flat, k1, b1t, k2, b2t, pool, tavg, wc_pad, bc_pad)

    return out_padded[:, :C]


def reference_forward(x, adj, W1, b1, W2, b2, Wc, bc):
    """Pure-JAX mirror of the PyTorch forward pass for verification."""
    B, T, N, F = x.shape
    xf = x.reshape(B * T, N, F)
    h = jnp.einsum("nm,gmf->gnf", adj, xf)
    h = jax.nn.relu(h @ W1.T + b1)                  # (B*T, N, H)
    h = jnp.einsum("nm,gmh->gnh", adj, h)
    h = jax.nn.relu(h @ W2.T + b2)                  # (B*T, N, H)
    h = h.reshape(B, T, N, -1).mean(axis=2)         # (B, T, H)
    pooled = h.mean(axis=1)                         # AdaptiveAvgPool1d(1) over T
    return pooled @ Wc.T + bc                       # (B, C)


if __name__ == "__main__":
    # Small shapes consistent with the module.
    B, T, N, F = 2, 8, 16, 16       # batch, frames, graph nodes, input_dim
    H, C = 32, 8                    # hidden_dim, num_classes

    key = jax.random.PRNGKey(0)
    kx, k1, k2, k3, k4, k5, k6 = jax.random.split(key, 7)

    x = jax.random.normal(kx, (B, T, N, F), dtype=jnp.float32)

    # Deterministic adjacency: normalized ring + self-loops.
    eye = jnp.eye(N, dtype=jnp.float32)
    ring = jnp.roll(eye, 1, axis=1) + jnp.roll(eye, -1, axis=1)
    adj = (eye + ring) / 3.0

    # nn.Linear parameters in PyTorch layout: W (out, in), b (out,).
    W1 = jax.random.normal(k1, (H, F), dtype=jnp.float32) * 0.1
    b1 = jax.random.normal(k2, (H,), dtype=jnp.float32) * 0.1
    W2 = jax.random.normal(k3, (H, H), dtype=jnp.float32) * 0.1
    b2 = jax.random.normal(k4, (H,), dtype=jnp.float32) * 0.1
    Wc = jax.random.normal(k5, (C, H), dtype=jnp.float32) * 0.1
    bc = jax.random.normal(k6, (C,), dtype=jnp.float32) * 0.1

    out = gcn_classifier_forward(x, adj, W1, b1, W2, b2, Wc, bc)
    out = jax.block_until_ready(out)

    ref = reference_forward(x, adj, W1, b1, W2, b2, Wc, bc)
    assert out.shape == (B, C)
    assert jnp.allclose(out, ref, atol=1e-3, rtol=1e-3), (out, ref)

    print("KERNEL_OK")
</pallas_src>

<mosaic_0001>
module attributes {stable_mosaic.version = 11 : i64} {
  func.func @gcn_classifier_kernel(%arg0: i32, %arg1: memref<16x256xf32, #tpu.memory_space<vmem>>, %arg2: memref<256x512xf32, #tpu.memory_space<vmem>>, %arg3: memref<1x512xf32, #tpu.memory_space<vmem>>, %arg4: memref<512x512xf32, #tpu.memory_space<vmem>>, %arg5: memref<1x512xf32, #tpu.memory_space<vmem>>, %arg6: memref<512x32xf32, #tpu.memory_space<vmem>>, %arg7: memref<2x16xf32, #tpu.memory_space<vmem>>, %arg8: memref<32x128xf32, #tpu.memory_space<vmem>>, %arg9: memref<1x128xf32, #tpu.memory_space<vmem>>, %arg10: memref<2x128xf32, #tpu.memory_space<vmem>>) attributes {dimension_semantics = [#tpu.dimension_semantics<arbitrary>], iteration_bounds = array<i64: 1>, scalar_prefetch = 0 : i64, scratch_operands = 0 : i64, tpu.core_type = #tpu.core_type<tc>, window_params = [{pipeline_mode = #tpu.pipeline_mode<synchronous>, transform_indices = @transform_0, window_bounds = array<i64: 16, 256>}, {pipeline_mode = #tpu.pipeline_mode<synchronous>, transform_indices = @transform_1, window_bounds = array<i64: 256, 512>}, {pipeline_mode = #tpu.pipeline_mode<synchronous>, transform_indices = @transform_2, window_bounds = array<i64: 1, 512>}, {pipeline_mode = #tpu.pipeline_mode<synchronous>, transform_indices = @transform_3, window_bounds = array<i64: 512, 512>}, {pipeline_mode = #tpu.pipeline_mode<synchronous>, transform_indices = @transform_4, window_bounds = array<i64: 1, 512>}, {pipeline_mode = #tpu.pipeline_mode<synchronous>, transform_indices = @transform_5, window_bounds = array<i64: 512, 32>}, {pipeline_mode = #tpu.pipeline_mode<synchronous>, transform_indices = @transform_6, window_bounds = array<i64: 2, 16>}, {pipeline_mode = #tpu.pipeline_mode<synchronous>, transform_indices = @transform_7, window_bounds = array<i64: 32, 128>}, {pipeline_mode = #tpu.pipeline_mode<synchronous>, transform_indices = @transform_8, window_bounds = array<i64: 1, 128>}, {pipeline_mode = #tpu.pipeline_mode<synchronous>, transform_indices = @transform_9, window_bounds = array<i64: 2, 128>}]} {
    %c0 = arith.constant 0 : index
    %c0_0 = arith.constant 0 : index
    %0 = vector.load %arg1[%c0, %c0_0] : memref<16x256xf32, #tpu.memory_space<vmem>>, vector<16x256xf32>
    %c0_1 = arith.constant 0 : index
    %c0_2 = arith.constant 0 : index
    %1 = vector.load %arg2[%c0_1, %c0_2] : memref<256x512xf32, #tpu.memory_space<vmem>>, vector<256x512xf32>
    %cst = arith.constant dense<0.000000e+00> : vector<16x512xf32>
    %2 = tpu.matmul %0, %1, %cst {dimension_numbers = #tpu.dot_dimension_numbers<[1], [0], [0], [1], [0, 0, 1, 1], [], []>} : vector<16x256xf32>, vector<256x512xf32>, vector<16x512xf32> -> vector<16x512xf32>
    %c0_3 = arith.constant 0 : index
    %c0_4 = arith.constant 0 : index
    %3 = vector.load %arg3[%c0_3, %c0_4] : memref<1x512xf32, #tpu.memory_space<vmem>>, vector<1x512xf32>
    %4 = vector.broadcast %3 : vector<1x512xf32> to vector<16x512xf32>
    %5 = arith.addf %2, %4 : vector<16x512xf32>
    %cst_5 = arith.constant 0.000000e+00 : f32
    %6 = vector.broadcast %cst_5 : f32 to vector<16x512xf32>
    %7 = arith.maximumf %5, %6 : vector<16x512xf32>
    %c0_6 = arith.constant 0 : index
    %c0_7 = arith.constant 0 : index
    %8 = vector.load %arg4[%c0_6, %c0_7] : memref<512x512xf32, #tpu.memory_space<vmem>>, vector<512x512xf32>
    %cst_8 = arith.constant dense<0.000000e+00> : vector<16x512xf32>
    %9 = tpu.matmul %7, %8, %cst_8 {dimension_numbers = #tpu.dot_dimension_numbers<[1], [0], [0], [1], [0, 0, 1, 1], [], []>} : vector<16x512xf32>, vector<512x512xf32>, vector<16x512xf32> -> vector<16x512xf32>
    %c0_9 = arith.constant 0 : index
    %c0_10 = arith.constant 0 : index
    %10 = vector.load %arg5[%c0_9, %c0_10] : memref<1x512xf32, #tpu.memory_space<vmem>>, vector<1x512xf32>
    %11 = vector.broadcast %10 : vector<1x512xf32> to vector<16x512xf32>
    %12 = arith.addf %9, %11 : vector<16x512xf32>
    %cst_11 = arith.constant 0.000000e+00 : f32
    %13 = vector.broadcast %cst_11 : f32 to vector<16x512xf32>
    %14 = arith.maximumf %12, %13 : vector<16x512xf32>
    %c0_12 = arith.constant 0 : index
    %c0_13 = arith.constant 0 : index
    %15 = vector.load %arg7[%c0_12, %c0_13] : memref<2x16xf32, #tpu.memory_space<vmem>>, vector<2x16xf32>
    %cst_14 = arith.constant dense<0.000000e+00> : vector<2x512xf32>
    %16 = tpu.matmul %15, %14, %cst_14 {dimension_numbers = #tpu.dot_dimension_numbers<[1], [0], [0], [1], [0, 0, 1, 1], [], []>} : vector<2x16xf32>, vector<16x512xf32>, vector<2x512xf32> -> vector<2x512xf32>
    %c0_15 = arith.constant 0 : index
    %c0_16 = arith.constant 0 : index
    %17 = vector.load %arg6[%c0_15, %c0_16] : memref<512x32xf32, #tpu.memory_space<vmem>>, vector<512x32xf32>
    %cst_17 = arith.constant dense<0.000000e+00> : vector<2x32xf32>
    %18 = tpu.matmul %16, %17, %cst_17 {dimension_numbers = #tpu.dot_dimension_numbers<[1], [0], [0], [1], [0, 0, 1, 1], [], []>} : vector<2x512xf32>, vector<512x32xf32>, vector<2x32xf32> -> vector<2x32xf32>
    %c0_18 = arith.constant 0 : index
    %c0_19 = arith.constant 0 : index
    %19 = vector.load %arg8[%c0_18, %c0_19] : memref<32x128xf32, #tpu.memory_space<vmem>>, vector<32x128xf32>
    %cst_20 = arith.constant dense<0.000000e+00> : vector<2x128xf32>
    %20 = tpu.matmul %18, %19, %cst_20 {dimension_numbers = #tpu.dot_dimension_numbers<[1], [0], [0], [1], [0, 0, 1, 1], [], []>} : vector<2x32xf32>, vector<32x128xf32>, vector<2x128xf32> -> vector<2x128xf32>
    %c0_21 = arith.constant 0 : index
    %c0_22 = arith.constant 0 : index
    %21 = vector.load %arg9[%c0_21, %c0_22] : memref<1x128xf32, #tpu.memory_space<vmem>>, vector<1x128xf32>
    %22 = vector.broadcast %21 : vector<1x128xf32> to vector<2x128xf32>
    %23 = arith.addf %20, %22 : vector<2x128xf32>
    %c0_23 = arith.constant 0 : index
    %c0_24 = arith.constant 0 : index
    %24 = vector.load %arg10[%c0_23, %c0_24] : memref<2x128xf32, #tpu.memory_space<vmem>>, vector<2x128xf32>
    tpu.vector_store %arg10[%c0_23, %c0_24], %23 {strides = array<i32>} : memref<2x128xf32, #tpu.memory_space<vmem>>, vector<2x128xf32>,
    return
  }
  func.func @transform_0(%arg0: i32) -> (i32, i32) {
    %c0_i32 = arith.constant 0 : i32
    %c0_i32_0 = arith.constant 0 : i32
    %c0_i32_1 = arith.constant 0 : i32
    return %c0_i32, %c0_i32_0 : i32, i32
  }
  func.func @transform_1(%arg0: i32) -> (i32, i32) {
    %c0_i32 = arith.constant 0 : i32
    %c0_i32_0 = arith.constant 0 : i32
    %c0_i32_1 = arith.constant 0 : i32
    return %c0_i32, %c0_i32_0 : i32, i32
  }
  func.func @transform_2(%arg0: i32) -> (i32, i32) {
    %c0_i32 = arith.constant 0 : i32
    %c0_i32_0 = arith.constant 0 : i32
    %c0_i32_1 = arith.constant 0 : i32
    return %c0_i32, %c0_i32_0 : i32, i32
  }
  func.func @transform_3(%arg0: i32) -> (i32, i32) {
    %c0_i32 = arith.constant 0 : i32
    %c0_i32_0 = arith.constant 0 : i32
    %c0_i32_1 = arith.constant 0 : i32
    return %c0_i32, %c0_i32_0 : i32, i32
  }
  func.func @transform_4(%arg0: i32) -> (i32, i32) {
    %c0_i32 = arith.constant 0 : i32
    %c0_i32_0 = arith.constant 0 : i32
    %c0_i32_1 = arith.constant 0 : i32
    return %c0_i32, %c0_i32_0 : i32, i32
  }
  func.func @transform_5(%arg0: i32) -> (i32, i32) {
    %c0_i32 = arith.constant 0 : i32
    %c0_i32_0 = arith.constant 0 : i32
    %c0_i32_1 = arith.constant 0 : i32
    return %c0_i32, %c0_i32_0 : i32, i32
  }
  func.func @transform_6(%arg0: i32) -> (i32, i32) {
    %c0_i32 = arith.constant 0 : i32
    %c0_i32_0 = arith.constant 0 : i32
    %c0_i32_1 = arith.constant 0 : i32
    return %c0_i32, %c0_i32_0 : i32, i32
  }
  func.func @transform_7(%arg0: i32) -> (i32, i32) {
    %c0_i32 = arith.constant 0 : i32
    %c0_i32_0 = arith.constant 0 : i32
    %c0_i32_1 = arith.constant 0 : i32
    return %c0_i32, %c0_i32_0 : i32, i32
  }
  func.func @transform_8(%arg0: i32) -> (i32, i32) {
    %c0_i32 = arith.constant 0 : i32
    %c0_i32_0 = arith.constant 0 : i32
    %c0_i32_1 = arith.constant 0 : i32
    return %c0_i32, %c0_i32_0 : i32, i32
  }
  func.func @transform_9(%arg0: i32) -> (i32, i32) {
    %c0_i32 = arith.constant 0 : i32
    %c0_i32_0 = arith.constant 0 : i32
    %c0_i32_1 = arith.constant 0 : i32
    return %c0_i32, %c0_i32_0 : i32, i32
  }
}

</mosaic_0001>

<bundles_post_ra>
// kernel: tpu_custom_call.1
= control target key start
LH: loop header
LB: loop body
LE: loop exit
PB: predicated region body
PF: predicated region fallthrough
CT: control target
= control target key end

     0   :  { %14 = vsyncpa [#allocation3], 0  ;;  %s2452_s0 = inlined_call_operand.vmem [shape: f32[16,256], index: 0, kind: input, shape index: {}]   ;;  %s2453_s1 = inlined_call_operand.hbm [shape: f32[256,512], index: 1, kind: input, shape index: {}]   ;;  %s2454_s2 = inlined_call_operand.vmem [shape: f32[1,512], index: 2, kind: input, shape index: {}]   ;;  %s2455_s3 = inlined_call_operand.hbm [shape: f32[512,512], index: 3, kind: input, shape index: {}]   ;;  %s2456_s4 = inlined_call_operand.vmem [shape: f32[1,512], index: 4, kind: input, shape index: {}]   ;;  %s2457_s5 = inlined_call_operand.vmem [shape: f32[512,32], index: 5, kind: input, shape index: {}]   ;;  %s2458_s6 = inlined_call_operand.vmem [shape: f32[2,16], index: 6, kind: input, shape index: {}]   ;;  %s2459_s7 = inlined_call_operand.vmem [shape: f32[32,128], index: 7, kind: input, shape index: {}]   ;;  %s2460_s8 = inlined_call_operand.vmem [shape: f32[1,128], index: 8, kind: input, shape index: {}]   ;;  %s2461_s9 = inlined_call_operand.hbm [shape: f32[2,128], index: 9, kind: output, shape index: {}]  }
   0x1   :  { %15 = vsyncpa [#allocation6], 0 }
   0x2   :  { %16 = vsyncpa [#allocation4], 0  ;;  %s2072_s30 = smov [#allocation2]   ;;  %s2000_s13 = scalar_lea.hbm %s2453_s1, 16384 }
   0x3   :  { %s24_s10 = sshll.u32 %s2072_s30, 4  ;;  %p2001_p0 = scmp.ne.s32.totalorder %s2453_s1, %s2000_s13  ;;  %s25_s10 = int_to_ptr.vmem [resolvable:$true] %s24_s10 }
   0x4   :  { %p2004_p1 = scmp.lt.u32.totalorder %s2000_s13, %s2453_s1 }
   0x6   :  { %p2006_p2 = pnand %p2004_p1, %p2001_p0 }
   0x8   :  { %2009 = shalt.err (!%p2006_p2)
}
   0x9   :  { %s2010_s18 = scalar_lea.vmem %s25_s10, 16384  ;;  %p2015_p4 = scmp.lt.s32.totalorder %s25_s10, %s25_s10 }
   0xa   :  { %p2011_p3 = scmp.ne.s32.totalorder %s25_s10, %s2010_s18  ;;  %p2016_p5 = scmp.lt.s32.totalorder %s2010_s18, %s2010_s18 }
   0xc   :  { %p2017_p6 = por %p2016_p5, %p2015_p4 }
   0xe   :  { %p2018_p7 = pnand %p2017_p6, %p2011_p3 }
  0x10   :  { %2021 = shalt.err (!%p2018_p7)
}
  0x11   :  { %s2073_s19 = smov 512   ;;  %s2074_s20 = smov 32  }
  0x12   :  { %30 = dma.hbm_to_vmem [thread:$0]  %s2453_s1, 16384, %s25_s10, [#allocation3], %s2073_s19, %s2073_s19, %s2074_s20  }
  0x13   :  { %s2075_s23 = smov [#allocation5]   ;;  %s2022_s27 = scalar_lea.hbm %s2455_s3, 32768 }
  0x14   :  { %s38_s24 = sshll.u32 %s2075_s23, 4  ;;  %p2023_p8 = scmp.ne.s32.totalorder %s2455_s3, %s2022_s27  ;;  %s39_s24 = int_to_ptr.vmem [resolvable:$true] %s38_s24 }
  0x15   :  { %p2026_p9 = scmp.lt.u32.totalorder %s2022_s27, %s2455_s3 }
  0x17   :  { %p2028_p10 = pnand %p2026_p9, %p2023_p8 }
  0x19   :  { %2031 = shalt.err (!%p2028_p10)
}
  0x1a   :  { %s2032_s12 = scalar_lea.vmem %s39_s24, 32768  ;;  %p2037_p12 = scmp.lt.s32.totalorder %s39_s24, %s39_s24 }
  0x1b   :  { %p2033_p11 = scmp.ne.s32.totalorder %s39_s24, %s2032_s12  ;;  %p2038_p13 = scmp.lt.s32.totalorder %s2032_s12, %s2032_s12 }
  0x1d   :  { %p2039_p0 = por %p2038_p13, %p2037_p12 }
  0x1f   :  { %p2040_p1 = pnand %p2039_p0, %p2033_p11 }
  0x21   :  { %2043 = shalt.err (!%p2040_p1)
}
  0x22   :  { %44 = dma.hbm_to_vmem [thread:$0]  %s2455_s3, 32768, %s39_s24, [#allocation6], %s2073_s19, %s2073_s19, %s2074_s20  }
  0x23   :  { %2066 = dma.done.wait [#allocation3], 16384  }
  0x24   :  { %2067 = vsyncadd [#allocation3], 4294950912 }
  0x25   :  { %2068 = dma.done.wait [#allocation6], 32768  }
  0x26   :  { %2069 = vsyncadd [#allocation6], 4294934528  ;;  %v66_v0 = vld [vmem:[#allocation2 + $0x8] sm:$0xff]  ;;  %v65_v2 = vld [vmem:[#allocation2] sm:$0xff]  ;;  %vm972_vm0 = vcmask 130048   ;;  %vm2078_vm1 = vmmov 0  }
  0x27   :  { %v70_v1 = vld [vmem:[#allocation2 + $0x28] sm:$0xff]  ;;  %v69_v4 = vld [vmem:[#allocation2 + $0x20] sm:$0xff]  ;;  %v68_v43 = vld [vmem:[#allocation2 + $0x18] sm:$0xff]  ;;  %vm1333_vm2 = vcmask 261120   ;;  %s2079_s30 = smov [#allocation7]  }
  0x28   :  { %v1514_v3 = vpack.c.bf16 %v70_v1, %v66_v0  ;;  %v74_v5 = vld [vmem:[#allocation2 + $0x48] sm:$0xff]  ;;  %v1516_v7 = vpack.c.bf16 %v69_v4, %v65_v2  ;;  %v73_v9 = vld [vmem:[#allocation2 + $0x40] sm:$0xff]  ;;  %v72_v44 = vld [vmem:[#allocation2 + $0x38] sm:$0xff] }
  0x29   :  { %v78_v6 = vld [vmem:[#allocation2 + $0x68] sm:$0xff]  ;;  %v77_v10 = vld [vmem:[#allocation2 + $0x60] sm:$0xff]  ;;  %v1578_v45 = vpack.c.bf16 %v72_v44, %v68_v43  ;;  %v67_v47 = vld [vmem:[#allocation2 + $0x10] sm:$0xff] }
  0x2a   :  { %v1518_v8 = vpack.c.bf16 %v78_v6, %v74_v5  ;;  %v82_v11 = vld [vmem:[#allocation2 + $0x88] sm:$0xff]  ;;  %1515 = vmatprep.subr.bf16.mxu0 %v1514_v3  ;;  %v1520_v13 = vpack.c.bf16 %v77_v10, %v73_v9  ;;  %v81_v15 = vld [vmem:[#allocation2 + $0x80] sm:$0xff]  ;;  %v71_v48 = vld [vmem:[#allocation2 + $0x30] sm:$0xff] }
  0x2b   :  { %v86_v12 = vld [vmem:[#allocation2 + $0xa8] sm:$0xff]  ;;  %1517 = vmatpush1.bf16.msra.mxu0 %v1516_v7  ;;  %v85_v16 = vld [vmem:[#allocation2 + $0xa0] sm:$0xff]  ;;  %v1580_v50 = vpack.c.bf16 %v71_v48, %v67_v47  ;;  %v76_v51 = vld [vmem:[#allocation2 + $0x58] sm:$0xff]  ;;  %1579 = vmatprep.subr.bf16.mxu1 %v1578_v45 }
  0x2c   :  { %1519 = vmatprep.subr.bf16.mxu0 %v1518_v8  ;;  %v1522_v14 = vpack.c.bf16 %v86_v12, %v82_v11  ;;  %v90_v17 = vld [vmem:[#allocation2 + $0xc8] sm:$0xff]  ;;  %v1524_v19 = vpack.c.bf16 %v85_v16, %v81_v15  ;;  %v89_v21 = vld [vmem:[#allocation2 + $0xc0] sm:$0xff]  ;;  %v80_v52 = vld [vmem:[#allocation2 + $0x78] sm:$0xff] }
  0x2d   :  { %v94_v18 = vld [vmem:[#allocation2 + $0xe8] sm:$0xff]  ;;  %v93_v22 = vld [vmem:[#allocation2 + $0xe0] sm:$0xff]  ;;  %v1582_v54 = vpack.c.bf16 %v80_v52, %v76_v51  ;;  %v75_v55 = vld [vmem:[#allocation2 + $0x50] sm:$0xff]  ;;  %1581 = vmatpush1.bf16.msra.mxu1 %v1580_v50 }
  0x2e   :  { %v1526_v20 = vpack.c.bf16 %v94_v18, %v90_v17  ;;  %v98_v23 = vld [vmem:[#allocation2 + $0x108] sm:$0xff]  ;;  %v1528_v25 = vpack.c.bf16 %v93_v22, %v89_v21  ;;  %v97_v27 = vld [vmem:[#allocation2 + $0x100] sm:$0xff]  ;;  %v79_v56 = vld [vmem:[#allocation2 + $0x70] sm:$0xff] }
  0x2f   :  { %1521 = vmatpush1.bf16.msra.mxu0 %v1520_v13  ;;  %v102_v24 = vld [vmem:[#allocation2 + $0x128] sm:$0xff]  ;;  %v101_v28 = vld [vmem:[#allocation2 + $0x120] sm:$0xff]  ;;  %v84_v57 = vld [vmem:[#allocation2 + $0x98] sm:$0xff]  ;;  %v1584_v61 = vpack.c.bf16 %v79_v56, %v75_v55  ;;  %1583 = vmatprep.subr.bf16.mxu1 %v1582_v54 }
  0x30   :  { %1523 = vmatprep.subr.bf16.mxu0 %v1522_v14  ;;  %v1530_v26 = vpack.c.bf16 %v102_v24, %v98_v23  ;;  %v106_v29 = vld [vmem:[#allocation2 + $0x148] sm:$0xff]  ;;  %v1532_v31 = vpack.c.bf16 %v101_v28, %v97_v27  ;;  %v105_v33 = vld [vmem:[#allocation2 + $0x140] sm:$0xff]  ;;  %v88_v62 = vld [vmem:[#allocation2 + $0xb8] sm:$0xff] }
  0x31   :  { %v110_v30 = vld [vmem:[#allocation2 + $0x168] sm:$0xff]  ;;  %v109_v34 = vld [vmem:[#allocation2 + $0x160] sm:$0xff]  ;;  %v1586_v0 = vpack.c.bf16 %v88_v62, %v84_v57  ;;  %v83_v1 = vld [vmem:[#allocation2 + $0x90] sm:$0xff]  ;;  %1585 = vmatpush1.bf16.msra.mxu1 %v1584_v61 }
  0x32   :  { %v1534_v32 = vpack.c.bf16 %v110_v30, %v106_v29  ;;  %v114_v35 = vld [vmem:[#allocation2 + $0x188] sm:$0xff]  ;;  %v1536_v37 = vpack.c.bf16 %v109_v34, %v105_v33  ;;  %v113_v38 = vld [vmem:[#allocation2 + $0x180] sm:$0xff]  ;;  %v87_v2 = vld [vmem:[#allocation2 + $0xb0] sm:$0xff] }
  0x33   :  { %1525 = vmatpush1.bf16.msra.mxu0 %v1524_v19  ;;  %v118_v36 = vld [vmem:[#allocation2 + $0x1a8] sm:$0xff]  ;;  %v117_v39 = vld [vmem:[#allocation2 + $0x1a0] sm:$0xff]  ;;  %v92_v3 = vld [vmem:[#allocation2 + $0xd8] sm:$0xff]  ;;  %v1588_v10 = vpack.c.bf16 %v87_v2, %v83_v1  ;;  %1587 = vmatprep.subr.bf16.mxu1 %v1586_v0 }
  0x34   :  { %1527 = vmatprep.subr.bf16.mxu0 %v1526_v20  ;;  %v122_v40 = vld [vmem:[#allocation2 + $0x1c8] sm:$0xff]  ;;  %v1538_v41 = vpack.c.bf16 %v118_v36, %v114_v35  ;;  %v121_v49 = vld [vmem:[#allocation2 + $0x1c0] sm:$0xff]  ;;  %v1540_v53 = vpack.c.bf16 %v117_v39, %v113_v38  ;;  %v96_v4 = vld [vmem:[#allocation2 + $0xf8] sm:$0xff] }
  0x35   :  { %v126_v42 = vld [vmem:[#allocation2 + $0x1e8] sm:$0xff]  ;;  %v125_v59 = vld [vmem:[#allocation2 + $0x1e0] sm:$0xff]  ;;  %v1590_v12 = vpack.c.bf16 %v96_v4, %v92_v3  ;;  %v91_v13 = vld [vmem:[#allocation2 + $0xd0] sm:$0xff]  ;;  %1589 = vmatpush1.bf16.msra.mxu1 %v1588_v10 }
  0x36   :  { %v62_v46 = vld [vmem:[%s2452_s0 + $0x8] sm:$0xff]  ;;  %v1542_v58 = vpack.c.bf16 %v126_v42, %v122_v40  ;;  %v1544_v5 = vpack.c.bf16 %v125_v59, %v121_v49  ;;  %v129_v7 = vld [vmem:[#allocation2 + $0x200] sm:$0xff]  ;;  %v95_v14 = vld [vmem:[#allocation2 + $0xf0] sm:$0xff] }
  0x37   :  { %1529 = vmatpush1.bf16.msra.mxu0 %v1528_v25  ;;  %279 = vmatprep.mubr.f32.mxu0 %v62_v46  ;;  %v130_v60 = vld [vmem:[#allocation2 + $0x208] sm:$0xff]  ;;  %v133_v8 = vld [vmem:[#allocation2 + $0x220] sm:$0xff]  ;;  %v100_v15 = vld [vmem:[#allocation2 + $0x118] sm:$0xff]  ;;  %v1592_v22 = vpack.c.bf16 %v95_v14, %v91_v13 }
  0x38   :  { %1531 = vmatprep.subr.bf16.mxu0 %v1530_v26  ;;  %356 = vmatprep.mubr.f32.mxu1 %v62_v46  ;;  %v134_v63 = vld [vmem:[#allocation2 + $0x228] sm:$0xff]  ;;  %v104_v16 = vld [vmem:[#allocation2 + $0x138] sm:$0xff]  ;;  %v1548_v17 = vpack.c.bf16 %v133_v8, %v129_v7  ;;  %v137_v19 = vld [vmem:[#allocation2 + $0x240] sm:$0xff] }
  0x39   :  { %v1546_v6 = vpack.c.bf16 %v134_v63, %v130_v60  ;;  %v138_v9 = vld [vmem:[#allocation2 + $0x248] sm:$0xff]  ;;  %v141_v20 = vld [vmem:[#allocation2 + $0x260] sm:$0xff]  ;;  %1591 = vmatprep.subr.bf16.mxu1 %v1590_v12  ;;  %v1594_v24 = vpack.c.bf16 %v104_v16, %v100_v15  ;;  %v99_v25 = vld [vmem:[#allocation2 + $0x110] sm:$0xff] }
  0x3a   :  { %v142_v11 = vld [vmem:[#allocation2 + $0x268] sm:$0xff]  ;;  %v103_v26 = vld [vmem:[#allocation2 + $0x130] sm:$0xff]  ;;  %v108_v27 = vld [vmem:[#allocation2 + $0x158] sm:$0xff]  ;;  %v1552_v29 = vpack.c.bf16 %v141_v20, %v137_v19  ;;  %1593 = vmatpush1.bf16.msra.mxu1 %v1592_v22 }
  0x3b   :  { %1533 = vmatpush1.bf16.msra.mxu0 %v1532_v31  ;;  %v1550_v18 = vpack.c.bf16 %v142_v11, %v138_v9  ;;  %v146_v21 = vld [vmem:[#allocation2 + $0x288] sm:$0xff]  ;;  %v112_v28 = vld [vmem:[#allocation2 + $0x178] sm:$0xff]  ;;  %v145_v31 = vld [vmem:[#allocation2 + $0x280] sm:$0xff]  ;;  %v1596_v34 = vpack.c.bf16 %v103_v26, %v99_v25  ;;  %1595 = vmatprep.subr.bf16.mxu1 %v1594_v24 }
  0x3c   :  { %1535 = vmatprep.subr.bf16.mxu0 %v1534_v32  ;;  %v150_v23 = vld [vmem:[#allocation2 + $0x2a8] sm:$0xff]  ;;  %v149_v32 = vld [vmem:[#allocation2 + $0x2a0] sm:$0xff]  ;;  %v1598_v36 = vpack.c.bf16 %v112_v28, %v108_v27  ;;  %v111_v38 = vld [vmem:[#allocation2 + $0x170] sm:$0xff] }
  0x3d   :  { %v1554_v30 = vpack.c.bf16 %v150_v23, %v146_v21  ;;  %v154_v33 = vld [vmem:[#allocation2 + $0x2c8] sm:$0xff]  ;;  %v116_v39 = vld [vmem:[#allocation2 + $0x198] sm:$0xff]  ;;  %v153_v43 = vld [vmem:[#allocation2 + $0x2c0] sm:$0xff] }
  0x3e   :  { %v158_v35 = vld [vmem:[#allocation2 + $0x2e8] sm:$0xff]  ;;  %v120_v40 = vld [vmem:[#allocation2 + $0x1b8] sm:$0xff]  ;;  %v157_v44 = vld [vmem:[#allocation2 + $0x2e0] sm:$0xff]  ;;  %1597 = vmatpush1.bf16.msra.mxu1 %v1596_v34 }
  0x3f   :  { %1537 = vmatpush1.bf16.msra.mxu0 %v1536_v37  ;;  %v107_v37 = vld [vmem:[#allocation2 + $0x150] sm:$0xff]  ;;  %v1558_v42 = vpack.c.bf16 %v158_v35, %v154_v33  ;;  %v162_v45 = vld [vmem:[#allocation2 + $0x308] sm:$0xff]  ;;  %1599 = vmatprep.subr.bf16.mxu1 %v1598_v36  ;;  %v1602_v48 = vpack.c.bf16 %v120_v40, %v116_v39  ;;  %v124_v51 = vld [vmem:[#allocation2 + $0x1d8] sm:$0xff] }
  0x40   :  { %1539 = vmatprep.subr.bf16.mxu0 %v1538_v41  ;;  %v1556_v41 = vpack.c.bf16 %v149_v32, %v145_v31  ;;  %v1600_v46 = vpack.c.bf16 %v111_v38, %v107_v37  ;;  %v166_v47 = vld [vmem:[#allocation2 + $0x328] sm:$0xff]  ;;  %v115_v49 = vld [vmem:[#allocation2 + $0x190] sm:$0xff]  ;;  %v128_v52 = vld [vmem:[#allocation2 + $0x1f8] sm:$0xff] }
  0x41   :  { %v119_v50 = vld [vmem:[#allocation2 + $0x1b0] sm:$0xff]  ;;  %v1562_v54 = vpack.c.bf16 %v166_v47, %v162_v45  ;;  %v161_v55 = vld [vmem:[#allocation2 + $0x300] sm:$0xff]  ;;  %v170_v57 = vld [vmem:[#allocation2 + $0x348] sm:$0xff]  ;;  %v1606_v60 = vpack.c.bf16 %v128_v52, %v124_v51 }
  0x42   :  { %v165_v56 = vld [vmem:[#allocation2 + $0x320] sm:$0xff]  ;;  %1601 = vmatpush1.bf16.msra.mxu1 %v1600_v46  ;;  %v174_v59 = vld [vmem:[#allocation2 + $0x368] sm:$0xff]  ;;  %v123_v61 = vld [vmem:[#allocation2 + $0x1d0] sm:$0xff] }
  0x43   :  { %1541 = vmatpush1.bf16.msra.mxu0 %v1540_v53  ;;  %v1560_v53 = vpack.c.bf16 %v157_v44, %v153_v43  ;;  %1603 = vmatprep.subr.bf16.mxu1 %v1602_v48  ;;  %v127_v62 = vld [vmem:[#allocation2 + $0x1f0] sm:$0xff]  ;;  %v132_v63 = vld [vmem:[#allocation2 + $0x218] sm:$0xff]  ;;  %v1564_v1 = vpack.c.bf16 %v165_v56, %v161_v55  ;;  %v1566_v2 = vpack.c.bf16 %v174_v59, %v170_v57  ;;  %v169_v3 = vld [vmem:[#allocation2 + $0x340] sm:$0xff] }
  0x44   :  { %1543 = vmatprep.subr.bf16.mxu0 %v1542_v58  ;;  %v1604_v58 = vpack.c.bf16 %v119_v50, %v115_v49  ;;  %v136_v0 = vld [vmem:[#allocation2 + $0x238] sm:$0xff]  ;;  %v173_v4 = vld [vmem:[#allocation2 + $0x360] sm:$0xff]  ;;  %v182_v7 = vld [vmem:[#allocation2 + $0x3a8] sm:$0xff] }
  0x45   :  { %v1610_v8 = vpack.c.bf16 %v136_v0, %v132_v63  ;;  %v131_v9 = vld [vmem:[#allocation2 + $0x210] sm:$0xff]  ;;  %v140_v11 = vld [vmem:[#allocation2 + $0x258] sm:$0xff]  ;;  %v1568_v13 = vpack.c.bf16 %v173_v4, %v169_v3  ;;  %v177_v15 = vld [vmem:[#allocation2 + $0x380] sm:$0xff] }
  0x46   :  { %1605 = vmatpush1.bf16.msra.mxu1 %v1604_v58  ;;  %v135_v10 = vld [vmem:[#allocation2 + $0x230] sm:$0xff]  ;;  %v144_v12 = vld [vmem:[#allocation2 + $0x278] sm:$0xff]  ;;  %v181_v16 = vld [vmem:[#allocation2 + $0x3a0] sm:$0xff] }
  0x47   :  { %1545 = vmatpush1.bf16.msra.mxu0 %v1544_v5  ;;  %v178_v5 = vld [vmem:[#allocation2 + $0x388] sm:$0xff]  ;;  %1607 = vmatprep.subr.bf16.mxu1 %v1606_v60  ;;  %v1614_v20 = vpack.c.bf16 %v144_v12, %v140_v11  ;;  %v139_v21 = vld [vmem:[#allocation2 + $0x250] sm:$0xff]  ;;  %v148_v23 = vld [vmem:[#allocation2 + $0x298] sm:$0xff]  ;;  %v1572_v25 = vpack.c.bf16 %v181_v16, %v177_v15 }
  0x48   :  { %1547 = vmatprep.subr.bf16.mxu0 %v1546_v6  ;;  %v1608_v6 = vpack.c.bf16 %v127_v62, %v123_v61  ;;  %v1570_v14 = vpack.c.bf16 %v182_v7, %v178_v5  ;;  %v190_v19 = vld [vmem:[#allocation2 + $0x3e8] sm:$0xff]  ;;  %v143_v22 = vld [vmem:[#allocation2 + $0x270] sm:$0xff]  ;;  %v152_v24 = vld [vmem:[#allocation2 + $0x2b8] sm:$0xff] }
  0x49   :  { %v185_v27 = vld [vmem:[#allocation2 + $0x3c0] sm:$0xff]  ;;  %v1618_v31 = vpack.c.bf16 %v152_v24, %v148_v23  ;;  %v151_v32 = vld [vmem:[#allocation2 + $0x2b0] sm:$0xff]  ;;  %v378_v33 = vld [vmem:[#allocation5 + $0x8] sm:$0xff] }
  0x4a   :  { %1609 = vmatpush1.bf16.msra.mxu1 %v1608_v6  ;;  %v189_v28 = vld [vmem:[#allocation2 + $0x3e0] sm:$0xff]  ;;  %v382_v34 = vld [vmem:[#allocation5 + $0x28] sm:$0xff]  ;;  %v156_v35 = vld [vmem:[#allocation2 + $0x2d8] sm:$0xff] }
  0x4b   :  { %1549 = vmatpush1.bf16.msra.mxu0 %v1548_v17  ;;  %v186_v17 = vld [vmem:[#allocation2 + $0x3c8] sm:$0xff]  ;;  %1611 = vmatprep.subr.bf16.mxu1 %v1610_v8  ;;  %v160_v36 = vld [vmem:[#allocation2 + $0x2f8] sm:$0xff]  ;;  %v1576_v37 = vpack.c.bf16 %v189_v28, %v185_v27  ;;  %v155_v39 = vld [vmem:[#allocation2 + $0x2d0] sm:$0xff]  ;;  %v1642_v40 = vpack.c.bf16 %v382_v34, %v378_v33 }
  0x4c   :  { %1551 = vmatprep.subr.bf16.mxu0 %v1550_v18  ;;  %v1612_v18 = vpack.c.bf16 %v135_v10, %v131_v9  ;;  %v1574_v26 = vpack.c.bf16 %v190_v19, %v186_v17  ;;  %v1622_v43 = vpack.c.bf16 %v160_v36, %v156_v35  ;;  %v159_v44 = vld [vmem:[#allocation2 + $0x2f0] sm:$0xff]  ;;  %v386_v45 = vld [vmem:[#allocation5 + $0x48] sm:$0xff]  ;;  %v164_v47 = vld [vmem:[#allocation2 + $0x318] sm:$0xff] }
  0x4d   :  { %v390_v46 = vld [vmem:[#allocation5 + $0x68] sm:$0xff]  ;;  %v168_v48 = vld [vmem:[#allocation2 + $0x338] sm:$0xff]  ;;  %v2160_v49 = vld [vmem:[%s2452_s0] sm:$0xff]  ;;  %v1624_v52 = vpack.c.bf16 %v159_v44, %v155_v39 }
  0x4e   :  { %1613 = vmatpush1.bf16.msra.mxu1 %v1612_v18  ;;  %v163_v50 = vld [vmem:[#allocation2 + $0x310] sm:$0xff]  ;;  %v385_v55 = vld [vmem:[#allocation5 + $0x40] sm:$0xff]  ;;  %v1626_v57 = vpack.c.bf16 %v168_v48, %v164_v47  ;;  %v394_v59 = vld [vmem:[#allocation5 + $0x88] sm:$0xff] }
  0x4f   :  { %1553 = vmatpush1.bf16.msra.mxu0 %v1552_v29  ;;  %v1616_v29 = vpack.c.bf16 %v143_v22, %v139_v21  ;;  %1615 = vmatprep.subr.bf16.mxu1 %v1614_v20  ;;  %v389_v56 = vld [vmem:[#allocation5 + $0x60] sm:$0xff]  ;;  %v167_v58 = vld [vmem:[#allocation2 + $0x330] sm:$0xff]  ;;  %v398_v60 = vld [vmem:[#allocation5 + $0xa8] sm:$0xff] }
  0x50   :  { %1555 = vmatprep.subr.bf16.mxu0 %v1554_v30  ;;  %v147_v30 = vld [vmem:[#allocation2 + $0x290] sm:$0xff]  ;;  %v172_v61 = vld [vmem:[#allocation2 + $0x358] sm:$0xff]  ;;  %v1648_v0 = vpack.c.bf16 %v389_v56, %v385_v55  ;;  %v1650_v3 = vpack.c.bf16 %v398_v60, %v394_v59  ;;  %v393_v4 = vld [vmem:[#allocation5 + $0x80] sm:$0xff] }
  0x51   :  { %v1620_v38 = vpack.c.bf16 %v151_v32, %v147_v30  ;;  %v176_v62 = vld [vmem:[#allocation2 + $0x378] sm:$0xff]  ;;  %v2172_v63 = vld [vmem:[%s2452_s0 + $0x10] sm:$0xff]  ;;  %v397_v5 = vld [vmem:[#allocation5 + $0xa0] sm:$0xff] }
  0x52   :  { %1617 = vmatpush1.bf16.msra.mxu1 %v1616_v29  ;;  %v1630_v6 = vpack.c.bf16 %v176_v62, %v172_v61  ;;  %v175_v7 = vld [vmem:[#allocation2 + $0x370] sm:$0xff]  ;;  %v402_v8 = vld [vmem:[#allocation5 + $0xc8] sm:$0xff]  ;;  %v180_v10 = vld [vmem:[#allocation2 + $0x398] sm:$0xff]  ;;  %v1652_v12 = vpack.c.bf16 %v397_v5, %v393_v4 }
  0x53   :  { %1557 = vmatpush1.bf16.msra.mxu0 %v1556_v41  ;;  %v377_v41 = vld [vmem:[#allocation5] sm:$0xff]  ;;  %1619 = vmatprep.subr.bf16.mxu1 %v1618_v31  ;;  %v406_v9 = vld [vmem:[#allocation5 + $0xe8] sm:$0xff]  ;;  %v184_v11 = vld [vmem:[#allocation2 + $0x3b8] sm:$0xff] }
  0x54   :  { %1559 = vmatprep.subr.bf16.mxu0 %v1558_v42  ;;  %v381_v42 = vld [vmem:[#allocation5 + $0x20] sm:$0xff]  ;;  %v1654_v15 = vpack.c.bf16 %v406_v9, %v402_v8  ;;  %v1634_v18 = vpack.c.bf16 %v184_v11, %v180_v10  ;;  %v183_v19 = vld [vmem:[#allocation2 + $0x3b0] sm:$0xff]  ;;  %v410_v20 = vld [vmem:[#allocation5 + $0x108] sm:$0xff] }
  0x55   :  { %v1644_v51 = vpack.c.bf16 %v381_v42, %v377_v41  ;;  %v401_v16 = vld [vmem:[#allocation5 + $0xc0] sm:$0xff]  ;;  %v414_v21 = vld [vmem:[#allocation5 + $0x128] sm:$0xff]  ;;  %v188_v22 = vld [vmem:[#allocation2 + $0x3d8] sm:$0xff] }
  0x56   :  { %1621 = vmatpush1.bf16.msra.mxu1 %v1620_v38  ;;  %v405_v17 = vld [vmem:[#allocation5 + $0xe0] sm:$0xff]  ;;  %v192_v23 = vld [vmem:[#allocation2 + $0x3f8] sm:$0xff]  ;;  %v1658_v27 = vpack.c.bf16 %v414_v21, %v410_v20  ;;  %v191_v31 = vld [vmem:[#allocation2 + $0x3f0] sm:$0xff] }
  0x57   :  { %1561 = vmatpush1.bf16.msra.mxu0 %v1560_v53  ;;  %v2165_v53 = vld [vmem:[%s2452_s0 + $0x18] sm:$0xff]  ;;  %1623 = vmatprep.subr.bf16.mxu1 %v1622_v43  ;;  %v1656_v24 = vpack.c.bf16 %v405_v17, %v401_v16  ;;  %v409_v28 = vld [vmem:[#allocation5 + $0x100] sm:$0xff]  ;;  %v1638_v30 = vpack.c.bf16 %v192_v23, %v188_v22  ;;  %v418_v32 = vld [vmem:[#allocation5 + $0x148] sm:$0xff] }
  0x58   :  { %1563 = vmatprep.subr.bf16.mxu0 %v1562_v54  ;;  %v1646_v54 = vpack.c.bf16 %v390_v46, %v386_v45  ;;  %v413_v29 = vld [vmem:[#allocation5 + $0x120] sm:$0xff]  ;;  %v422_v33 = vld [vmem:[#allocation5 + $0x168] sm:$0xff]  ;;  %v380_v34 = vld [vmem:[#allocation5 + $0x18] sm:$0xff] }
  0x59   :  { %v384_v35 = vld [vmem:[#allocation5 + $0x38] sm:$0xff]  ;;  %v1660_v36 = vpack.c.bf16 %v413_v29, %v409_v28  ;;  %v1662_v38 = vpack.c.bf16 %v422_v33, %v418_v32  ;;  %v417_v39 = vld [vmem:[#allocation5 + $0x140] sm:$0xff]  ;;  %v379_v42 = vld [vmem:[#allocation5 + $0x10] sm:$0xff] }
  0x5a   :  { %1625 = vmatpush1.bf16.msra.mxu1 %v1624_v52  ;;  %v1770_v41 = vpack.c.bf16 %v384_v35, %v380_v34  ;;  %v383_v43 = vld [vmem:[#allocation5 + $0x30] sm:$0xff]  ;;  %v388_v44 = vld [vmem:[#allocation5 + $0x58] sm:$0xff]  ;;  %v426_v46 = vld [vmem:[#allocation5 + $0x188] sm:$0xff] }
  0x5b   :  { %1565 = vmatpush1.bf16.msra.mxu0 %v1564_v1  ;;  %v1628_v1 = vpack.c.bf16 %v167_v58, %v163_v50  ;;  %1627 = vmatprep.subr.bf16.mxu1 %v1626_v57  ;;  %v392_v45 = vld [vmem:[#allocation5 + $0x78] sm:$0xff]  ;;  %v430_v47 = vld [vmem:[#allocation5 + $0x1a8] sm:$0xff]  ;;  %v1772_v50 = vpack.c.bf16 %v383_v43, %v379_v42  ;;  %v425_v52 = vld [vmem:[#allocation5 + $0x180] sm:$0xff] }
  0x5c   :  { %1567 = vmatprep.subr.bf16.mxu0 %v1566_v2  ;;  %v171_v2 = vld [vmem:[#allocation2 + $0x350] sm:$0xff]  ;;  %v1774_v55 = vpack.c.bf16 %v392_v45, %v388_v44  ;;  %v1666_v57 = vpack.c.bf16 %v430_v47, %v426_v46  ;;  %v434_v58 = vld [vmem:[#allocation5 + $0x1c8] sm:$0xff]  ;;  %v396_v60 = vld [vmem:[#allocation5 + $0x98] sm:$0xff] }
  0x5d   :  { %v391_v56 = vld [vmem:[#allocation5 + $0x70] sm:$0xff]  ;;  %v438_v59 = vld [vmem:[#allocation5 + $0x1e8] sm:$0xff]  ;;  %v400_v61 = vld [vmem:[#allocation5 + $0xb8] sm:$0xff] }
  0x5e   :  { %1629 = vmatpush1.bf16.msra.mxu1 %v1628_v1  ;;  %v395_v1 = vld [vmem:[#allocation5 + $0x90] sm:$0xff]  ;;  %v437_v4 = vld [vmem:[#allocation5 + $0x1e0] sm:$0xff]  ;;  %v1778_v5 = vpack.c.bf16 %v400_v61, %v396_v60  ;;  %v446_v8 = vld [vmem:[#allocation5 + $0x228] sm:$0xff] }
  0x5f   :  { %1569 = vmatpush1.bf16.msra.mxu0 %v1568_v13  ;;  %v1632_v13 = vpack.c.bf16 %v175_v7, %v171_v2  ;;  %1631 = vmatprep.subr.bf16.mxu1 %v1630_v6  ;;  %v1670_v2 = vpack.c.bf16 %v438_v59, %v434_v58  ;;  %v399_v6 = vld [vmem:[#allocation5 + $0xb0] sm:$0xff]  ;;  %v442_v7 = vld [vmem:[#allocation5 + $0x208] sm:$0xff]  ;;  %v404_v9 = vld [vmem:[#allocation5 + $0xd8] sm:$0xff] }
  0x60   :  { %1571 = vmatprep.subr.bf16.mxu0 %v1570_v14  ;;  %v179_v14 = vld [vmem:[#allocation2 + $0x390] sm:$0xff]  ;;  %v408_v10 = vld [vmem:[#allocation5 + $0xf8] sm:$0xff]  ;;  %v450_v17 = vld [vmem:[#allocation5 + $0x248] sm:$0xff] }
  0x61   :  { %v403_v11 = vld [vmem:[#allocation5 + $0xd0] sm:$0xff]  ;;  %v416_v20 = vld [vmem:[#allocation5 + $0x138] sm:$0xff]  ;;  %v458_v28 = vld [vmem:[#allocation5 + $0x288] sm:$0xff] }
  0x62   :  { %1633 = vmatpush1.bf16.msra.mxu1 %v1632_v13  ;;  %v441_v13 = vld [vmem:[#allocation5 + $0x200] sm:$0xff]  ;;  %v407_v16 = vld [vmem:[#allocation5 + $0xf0] sm:$0xff]  ;;  %v462_v29 = vld [vmem:[#allocation5 + $0x2a8] sm:$0xff] }
  0x63   :  { %1573 = vmatpush1.bf16.msra.mxu0 %v1572_v25  ;;  %v1636_v25 = vpack.c.bf16 %v183_v19, %v179_v14  ;;  %1635 = vmatprep.subr.bf16.mxu1 %v1634_v18  ;;  %v445_v14 = vld [vmem:[#allocation5 + $0x220] sm:$0xff]  ;;  %v454_v18 = vld [vmem:[#allocation5 + $0x268] sm:$0xff]  ;;  %v412_v19 = vld [vmem:[#allocation5 + $0x118] sm:$0xff]  ;;  %v1682_v35 = vpack.c.bf16 %v462_v29, %v458_v28 }
  0x64   :  { %1575 = vmatprep.subr.bf16.mxu0 %v1574_v26  ;;  %v187_v26 = vld [vmem:[#allocation2 + $0x3d0] sm:$0xff]  ;;  %v1676_v21 = vpack.c.bf16 %v445_v14, %v441_v13  ;;  %v1678_v23 = vpack.c.bf16 %v454_v18, %v450_v17  ;;  %v428_v42 = vld [vmem:[#allocation5 + $0x198] sm:$0xff]  ;;  %v490_v13 = vld [vmem:[#allocation5 + $0x388] sm:$0xff] }
  0x65   :  { %v411_v22 = vld [vmem:[#allocation5 + $0x110] sm:$0xff]  ;;  %v432_v43 = vld [vmem:[#allocation5 + $0x1b8] sm:$0xff]  ;;  %v494_v14 = vld [vmem:[#allocation5 + $0x3a8] sm:$0xff] }
  0x66   :  { %1637 = vmatpush1.bf16.msra.mxu1 %v1636_v25  ;;  %v453_v25 = vld [vmem:[#allocation5 + $0x260] sm:$0xff]  ;;  %v419_v34 = vld [vmem:[#allocation5 + $0x150] sm:$0xff] }
  0x67   :  { %1577 = vmatpush1.bf16.msra.mxu0 %v1576_v37  ;;  %v1640_v37 = vpack.c.bf16 %v191_v31, %v187_v26  ;;  %1639 = vmatprep.subr.bf16.mxu1 %v1638_v30  ;;  %v1786_v26 = vpack.c.bf16 %v416_v20, %v412_v19  ;;  %v420_v30 = vld [vmem:[#allocation5 + $0x158] sm:$0xff]  ;;  %v427_v46 = vld [vmem:[#allocation5 + $0x190] sm:$0xff]  ;;  %v1698_v19 = vpack.c.bf16 %v494_v14, %v490_v13  ;;  %v489_v20 = vld [vmem:[#allocation5 + $0x380] sm:$0xff] }
  0x68   :  { %1643 = vmatprep.subr.bf16.mxu0 %v1642_v40  ;;  %v421_v40 = vld [vmem:[#allocation5 + $0x160] sm:$0xff]  ;;  %v424_v31 = vld [vmem:[#allocation5 + $0x178] sm:$0xff]  ;;  %v435_v60 = vld [vmem:[#allocation5 + $0x1d0] sm:$0xff] }
  0x69   :  { %v1664_v48 = vpack.c.bf16 %v421_v40, %v417_v39  ;;  %v423_v39 = vld [vmem:[#allocation5 + $0x170] sm:$0xff]  ;;  %v466_v40 = vld [vmem:[#allocation5 + $0x2c8] sm:$0xff]  ;;  %v2184_v14 = vld [vmem:[%s2454_s2] sm:$0xf] }
  0x6a   :  { %280 = vmatmul.mubr.f32.vlgmr.msra.gmra.mrb[0].mxu0 %v2160_v49  ;;  %1641 = vmatpush1.bf16.msra.mxu1 %v1640_v37  ;;  %v461_v37 = vld [vmem:[#allocation5 + $0x2a0] sm:$0xff]  ;;  %v1792_v45 = vpack.c.bf16 %v423_v39, %v419_v34  ;;  %v459_v29 = vld [vmem:[#allocation5 + $0x290] sm:$0xff] }
  0x6b   :  { %285 = vmatprep.mubr.f32.mxu0 %v2165_v53  ;;  %1645 = vmatpush1.bf16.msra.mxu0 %v1644_v51  ;;  %v387_v51 = vld [vmem:[#allocation5 + $0x50] sm:$0xff] }
  0x6c   :  { %1647 = vmatprep.subr.bf16.mxu0 %v1646_v54  ;;  %v429_v54 = vld [vmem:[#allocation5 + $0x1a0] sm:$0xff]  ;;  %1771 = vmatprep.subr.bf16.mxu1 %v1770_v41  ;;  %v470_v41 = vld [vmem:[#allocation5 + $0x2e8] sm:$0xff] }
  0x6d   :  { %357 = vmatmul.mubr.f32.vlgmr.msra.gmra.mrb[0].mxu1 %v2160_v49  ;;  %v1668_v62 = vpack.c.bf16 %v429_v54, %v425_v52  ;;  %v1686_v47 = vpack.c.bf16 %v470_v41, %v466_v40  ;;  %v431_v52 = vld [vmem:[#allocation5 + $0x1b0] sm:$0xff]  ;;  %v474_v54 = vld [vmem:[#allocation5 + $0x308] sm:$0xff] }
  0x6e   :  { %286 = vmatmul.mubr.f32.gmra.mrb[2].mxu0 %v2172_v63  ;;  %362 = vmatprep.mubr.f32.mxu1 %v2165_v53  ;;  %v1780_v53 = vpack.c.bf16 %v399_v6, %v395_v1  ;;  %v1796_v59 = vpack.c.bf16 %v431_v52, %v427_v46  ;;  %v448_v6 = vld [vmem:[#allocation5 + $0x238] sm:$0xff]  ;;  %v475_v41 = vld [vmem:[#allocation5 + $0x310] sm:$0xff] }
  0x6f   :  { %1649 = vmatpush1.bf16.msra.mxu0 %v1648_v0  ;;  %1773 = vmatpush1.bf16.msra.mxu1 %v1772_v50  ;;  %v1776_v0 = vpack.c.bf16 %v391_v56, %v387_v51  ;;  %v469_v50 = vld [vmem:[#allocation5 + $0x2e0] sm:$0xff]  ;;  %v1794_v51 = vpack.c.bf16 %v432_v43, %v428_v42  ;;  %v436_v56 = vld [vmem:[#allocation5 + $0x1d8] sm:$0xff]  ;;  %v479_v42 = vld [vmem:[#allocation5 + $0x330] sm:$0xff] }
  0x70   :  { %1651 = vmatprep.subr.bf16.mxu0 %v1650_v3  ;;  %v433_v3 = vld [vmem:[#allocation5 + $0x1c0] sm:$0xff]  ;;  %1775 = vmatprep.subr.bf16.mxu1 %v1774_v55  ;;  %v478_v55 = vld [vmem:[#allocation5 + $0x328] sm:$0xff]  ;;  %v484_v43 = vld [vmem:[#allocation5 + $0x358] sm:$0xff] }
  0x71   :  { %363 = vmatmul.mubr.f32.gmra.mrb[2].mxu1 %v2172_v63  ;;  %v1672_v49 = vpack.c.bf16 %v437_v4, %v433_v3  ;;  %v1784_v63 = vpack.c.bf16 %v407_v16, %v403_v11  ;;  %v1690_v61 = vpack.c.bf16 %v478_v55, %v474_v54  ;;  %v482_v3 = vld [vmem:[#allocation5 + $0x348] sm:$0xff]  ;;  %v456_v16 = vld [vmem:[#allocation5 + $0x278] sm:$0xff]  ;;  %v491_v55 = vld [vmem:[#allocation5 + $0x390] sm:$0xff] }
  0x72   :  { %v486_v4 = vld [vmem:[#allocation5 + $0x368] sm:$0xff] }
  0x73   :  { %1653 = vmatpush1.bf16.msra.mxu0 %v1652_v12  ;;  %1777 = vmatpush1.bf16.msra.mxu1 %v1776_v0  ;;  %v1674_v12 = vpack.c.bf16 %v446_v8, %v442_v7  ;;  %v477_v0 = vld [vmem:[#allocation5 + $0x320] sm:$0xff] }
  0x74   :  { %1655 = vmatprep.subr.bf16.mxu0 %v1654_v15  ;;  %1779 = vmatprep.subr.bf16.mxu1 %v1778_v5  ;;  %v1782_v15 = vpack.c.bf16 %v408_v10, %v404_v9  ;;  %v444_v5 = vld [vmem:[#allocation5 + $0x218] sm:$0xff]  ;;  %v443_v9 = vld [vmem:[#allocation5 + $0x210] sm:$0xff]  ;;  %v1694_v10 = vpack.c.bf16 %v486_v4, %v482_v3 }
  0x75   :  { %v1802_v11 = vpack.c.bf16 %v448_v6, %v444_v5  ;;  %v499_v4 = vld [vmem:[#allocation5 + $0x3d0] sm:$0xff] }
  0x76   :  { %v503_v5 = vld [vmem:[#allocation5 + $0x3f0] sm:$0xff] }
  0x77   :  { %1657 = vmatpush1.bf16.msra.mxu0 %v1656_v24  ;;  %1781 = vmatpush1.bf16.msra.mxu1 %v1780_v53  ;;  %v449_v24 = vld [vmem:[#allocation5 + $0x240] sm:$0xff]  ;;  %v1832_v6 = vpack.c.bf16 %v503_v5, %v499_v4 }
  0x78   :  { %1659 = vmatprep.subr.bf16.mxu0 %v1658_v27  ;;  %1783 = vmatprep.subr.bf16.mxu1 %v1782_v15  ;;  %v415_v27 = vld [vmem:[#allocation5 + $0x130] sm:$0xff]  ;;  %v1680_v32 = vpack.c.bf16 %v453_v25, %v449_v24  ;;  %v485_v53 = vld [vmem:[#allocation5 + $0x360] sm:$0xff]  ;;  %v452_v15 = vld [vmem:[#allocation5 + $0x258] sm:$0xff] }
  0x79   :  { %v1788_v33 = vpack.c.bf16 %v415_v27, %v411_v22  ;;  %v451_v22 = vld [vmem:[#allocation5 + $0x250] sm:$0xff]  ;;  %v460_v24 = vld [vmem:[#allocation5 + $0x298] sm:$0xff] }
  0x7a   :  { %v464_v25 = vld [vmem:[#allocation5 + $0x2b8] sm:$0xff] }
  0x7b   :  { %1661 = vmatpush1.bf16.msra.mxu0 %v1660_v36  ;;  %1785 = vmatpush1.bf16.msra.mxu1 %v1784_v63  ;;  %v457_v36 = vld [vmem:[#allocation5 + $0x280] sm:$0xff]  ;;  %v1806_v63 = vpack.c.bf16 %v456_v16, %v452_v15  ;;  %v1810_v28 = vpack.c.bf16 %v464_v25, %v460_v24  ;;  %v514_v24 = vld [vmem:[#allocation5 + $0x448] sm:$0xff] }
  0x7c   :  { %1663 = vmatprep.subr.bf16.mxu0 %v1662_v38  ;;  %1787 = vmatprep.subr.bf16.mxu1 %v1786_v26  ;;  %v1790_v38 = vpack.c.bf16 %v424_v31, %v420_v30  ;;  %v1684_v44 = vpack.c.bf16 %v461_v37, %v457_v36  ;;  %v463_v30 = vld [vmem:[#allocation5 + $0x2b0] sm:$0xff]  ;;  %v468_v31 = vld [vmem:[#allocation5 + $0x2d8] sm:$0xff] }
  0x7d   :  { %v471_v36 = vld [vmem:[#allocation5 + $0x2f0] sm:$0xff]  ;;  %v476_v37 = vld [vmem:[#allocation5 + $0x318] sm:$0xff] }
  0x7f   :  { %1665 = vmatpush1.bf16.msra.mxu0 %v1664_v48  ;;  %1789 = vmatpush1.bf16.msra.mxu1 %v1788_v33  ;;  %v465_v48 = vld [vmem:[#allocation5 + $0x2c0] sm:$0xff]  ;;  %v1812_v33 = vpack.c.bf16 %v463_v30, %v459_v29 }
  0x80   :  { %1667 = vmatprep.subr.bf16.mxu0 %v1666_v57  ;;  %1791 = vmatprep.subr.bf16.mxu1 %v1790_v38  ;;  %v440_v57 = vld [vmem:[#allocation5 + $0x1f8] sm:$0xff]  ;;  %v1688_v58 = vpack.c.bf16 %v469_v50, %v465_v48  ;;  %v487_v48 = vld [vmem:[#allocation5 + $0x370] sm:$0xff] }
  0x81   :  { %v1798_v1 = vpack.c.bf16 %v440_v57, %v436_v56  ;;  %v480_v38 = vld [vmem:[#allocation5 + $0x338] sm:$0xff]  ;;  %v495_v56 = vld [vmem:[#allocation5 + $0x3b0] sm:$0xff] }
  0x82   :  { %v1818_v40 = vpack.c.bf16 %v480_v38, %v476_v37  ;;  %v492_v50 = vld [vmem:[#allocation5 + $0x398] sm:$0xff]  ;;  %v1828_v57 = vpack.c.bf16 %v495_v56, %v491_v55  ;;  %v515_v38 = vld [vmem:[#allocation5 + $0x450] sm:$0xff] }
  0x83   :  { %1669 = vmatpush1.bf16.msra.mxu0 %v1668_v62  ;;  %1793 = vmatpush1.bf16.msra.mxu1 %v1792_v45  ;;  %v473_v62 = vld [vmem:[#allocation5 + $0x300] sm:$0xff]  ;;  %v1820_v45 = vpack.c.bf16 %v479_v42, %v475_v41 }
  0x84   :  { %1671 = vmatprep.subr.bf16.mxu0 %v1670_v2  ;;  %1795 = vmatprep.subr.bf16.mxu1 %v1794_v51  ;;  %v439_v2 = vld [vmem:[#allocation5 + $0x1f0] sm:$0xff]  ;;  %v1692_v7 = vpack.c.bf16 %v477_v0, %v473_v62  ;;  %v496_v51 = vld [vmem:[#allocation5 + $0x3b8] sm:$0xff]  ;;  %v497_v0 = vld [vmem:[#allocation5 + $0x3c0] sm:$0xff] }
  0x85   :  { %v1800_v8 = vpack.c.bf16 %v439_v2, %v435_v60  ;;  %v1826_v54 = vpack.c.bf16 %v496_v51, %v492_v50  ;;  %v500_v60 = vld [vmem:[#allocation5 + $0x3d8] sm:$0xff]  ;;  %v521_v51 = vld [vmem:[#allocation5 + $0x480] sm:$0xff] }
  0x86   :  { %v504_v62 = vld [vmem:[#allocation5 + $0x3f8] sm:$0xff] }
  0x87   :  { %1673 = vmatpush1.bf16.msra.mxu0 %v1672_v49  ;;  %1797 = vmatpush1.bf16.msra.mxu1 %v1796_v59  ;;  %v481_v49 = vld [vmem:[#allocation5 + $0x340] sm:$0xff]  ;;  %v502_v59 = vld [vmem:[#allocation5 + $0x3e8] sm:$0xff]  ;;  %v1830_v2 = vpack.c.bf16 %v504_v62, %v500_v60  ;;  %v536_v62 = vld [vmem:[#allocation5 + $0x4f8] sm:$0xff] }
  0x88   :  { %1675 = vmatprep.subr.bf16.mxu0 %v1674_v12  ;;  %1799 = vmatprep.subr.bf16.mxu1 %v1798_v1  ;;  %v447_v12 = vld [vmem:[#allocation5 + $0x230] sm:$0xff]  ;;  %v1696_v17 = vpack.c.bf16 %v485_v53, %v481_v49  ;;  %v501_v1 = vld [vmem:[#allocation5 + $0x3e0] sm:$0xff]  ;;  %v512_v49 = vld [vmem:[#allocation5 + $0x438] sm:$0xff] }
  0x89   :  { %v1804_v18 = vpack.c.bf16 %v447_v12, %v443_v9  ;;  %v1704_v3 = vpack.c.bf16 %v501_v1, %v497_v0  ;;  %v508_v9 = vld [vmem:[#allocation5 + $0x418] sm:$0xff]  ;;  %v534_v60 = vld [vmem:[#allocation5 + $0x4e8] sm:$0xff] }
  0x8a   :  { %v1834_v53 = vpack.c.bf16 %v512_v49, %v508_v9  ;;  %v542_v9 = vld [vmem:[#allocation5 + $0x528] sm:$0xff]  ;;  %v544_v49 = vld [vmem:[#allocation5 + $0x538] sm:$0xff] }
  0x8b   :  { %1677 = vmatpush1.bf16.msra.mxu0 %v1676_v21  ;;  %1801 = vmatpush1.bf16.msra.mxu1 %v1800_v8  ;;  %v493_v21 = vld [vmem:[#allocation5 + $0x3a0] sm:$0xff]  ;;  %v510_v8 = vld [vmem:[#allocation5 + $0x428] sm:$0xff] }
  0x8c   :  { %1679 = vmatprep.subr.bf16.mxu0 %v1678_v23  ;;  %1803 = vmatprep.subr.bf16.mxu1 %v1802_v11  ;;  %v455_v23 = vld [vmem:[#allocation5 + $0x270] sm:$0xff]  ;;  %v1700_v26 = vpack.c.bf16 %v493_v21, %v489_v20  ;;  %v195_v11 = vlaneseq  ;;  %v509_v20 = vld [vmem:[#allocation5 + $0x420] sm:$0xff] }
  0x8d   :  { %v1808_v27 = vpack.c.bf16 %v455_v23, %v451_v22  ;;  %v507_v22 = vld [vmem:[#allocation5 + $0x410] sm:$0xff] }
  0x8e   :  { %v2178_v12 = vshrl.u32 %v195_v11, 7  ;;  %v511_v23 = vld [vmem:[#allocation5 + $0x430] sm:$0xff] }
  0x8f   :  { %1681 = vmatpush1.bf16.msra.mxu0 %v1680_v32  ;;  %1805 = vmatpush1.bf16.msra.mxu1 %v1804_v18  ;;  %v472_v32 = vld [vmem:[#allocation5 + $0x2f8] sm:$0xff] }
  0x90   :  { %1683 = vmatprep.subr.bf16.mxu0 %v1682_v35  ;;  %1807 = vmatprep.subr.bf16.mxu1 %v1806_v63  ;;  %v1814_v34 = vpack.c.bf16 %v472_v32, %v468_v31  ;;  %v467_v35 = vld [vmem:[#allocation5 + $0x2d0] sm:$0xff]  ;;  %v197_v13 = vsub.s32 0, %v2178_v12  ;;  %v201_v15 = vsub.s32 1, %v2178_v12  ;;  %v1836_v31 = vpack.c.bf16 %v511_v23, %v507_v22  ;;  %v513_v32 = vld [vmem:[#allocation5 + $0x440] sm:$0xff]  ;;  %v546_v22 = vld [vmem:[#allocation5 + $0x548] sm:$0xff] }
  0x91   :  { %v1816_v39 = vpack.c.bf16 %v471_v36, %v467_v35  ;;  %v550_v23 = vld [vmem:[#allocation5 + $0x568] sm:$0xff] }
  0x92   :  { %v198_v16 = vrot.slane %v2184_v14, %v197_v13 }
  0x93   :  { %1685 = vmatpush1.bf16.msra.mxu0 %v1684_v44  ;;  %1809 = vmatpush1.bf16.msra.mxu1 %v1808_v27  ;;  %v488_v44 = vld [vmem:[#allocation5 + $0x378] sm:$0xff] }
  0x94   :  { %1687 = vmatprep.subr.bf16.mxu0 %v1686_v47  ;;  %1811 = vmatprep.subr.bf16.mxu1 %v1810_v28  ;;  %v1822_v46 = vpack.c.bf16 %v488_v44, %v484_v43  ;;  %v483_v47 = vld [vmem:[#allocation5 + $0x350] sm:$0xff]  ;;  %v516_v27 = vld [vmem:[#allocation5 + $0x458] sm:$0xff]  ;;  %v526_v43 = vld [vmem:[#allocation5 + $0x4a8] sm:$0xff] }
  0x95   :  { %v1824_v52 = vpack.c.bf16 %v487_v48, %v483_v47  ;;  %v520_v28 = vld [vmem:[#allocation5 + $0x478] sm:$0xff] }
  0x96   :  { %v1838_v37 = vpack.c.bf16 %v520_v28, %v516_v27  ;;  %v524_v44 = vld [vmem:[#allocation5 + $0x498] sm:$0xff] }
  0x97   :  { %1689 = vmatpush1.bf16.msra.mxu0 %v1688_v58  ;;  %1813 = vmatpush1.bf16.msra.mxu1 %v1812_v33  ;;  %v498_v58 = vld [vmem:[#allocation5 + $0x3c8] sm:$0xff]  ;;  %v517_v33 = vld [vmem:[#allocation5 + $0x460] sm:$0xff] }
  0x98   :  { %1691 = vmatprep.subr.bf16.mxu0 %v1690_v61  ;;  %1815 = vmatprep.subr.bf16.mxu1 %v1814_v34  ;;  %v1702_v61 = vpack.c.bf16 %v502_v59, %v498_v58  ;;  %v1712_v48 = vpack.c.bf16 %v517_v33, %v513_v32  ;;  %v527_v58 = vld [vmem:[#allocation5 + $0x4b0] sm:$0xff]  ;;  %v530_v59 = vld [vmem:[#allocation5 + $0x4c8] sm:$0xff] }
  0x99   :  { %v1718_v4 = vpack.c.bf16 %v534_v60, %v530_v59  ;;  %v547_v33 = vld [vmem:[#allocation5 + $0x550] sm:$0xff] }
  0x9b   :  { %1693 = vmatpush1.bf16.msra.mxu0 %v1692_v7  ;;  %1817 = vmatpush1.bf16.msra.mxu1 %v1816_v39  ;;  %v506_v7 = vld [vmem:[#allocation5 + $0x408] sm:$0xff]  ;;  %v519_v39 = vld [vmem:[#allocation5 + $0x470] sm:$0xff] }
  0x9c   :  { %1695 = vmatprep.subr.bf16.mxu0 %v1694_v10  ;;  %1819 = vmatprep.subr.bf16.mxu1 %v1818_v40  ;;  %v1706_v10 = vpack.c.bf16 %v510_v8, %v506_v7  ;;  %v522_v40 = vld [vmem:[#allocation5 + $0x488] sm:$0xff]  ;;  %v1840_v50 = vpack.c.bf16 %v519_v39, %v515_v38  ;;  %v535_v7 = vld [vmem:[#allocation5 + $0x4f0] sm:$0xff]  ;;  %v556_v38 = vld [vmem:[#allocation5 + $0x598] sm:$0xff] }
  0x9d   :  { %v1714_v55 = vpack.c.bf16 %v526_v43, %v522_v40  ;;  %v538_v8 = vld [vmem:[#allocation5 + $0x508] sm:$0xff]  ;;  %v560_v39 = vld [vmem:[#allocation5 + $0x5b8] sm:$0xff] }
  0x9f   :  { %1697 = vmatpush1.bf16.msra.mxu0 %v1696_v17  ;;  %1821 = vmatpush1.bf16.msra.mxu1 %v1820_v45  ;;  %v202_v17 = vrot.slane %v2184_v14, %v201_v15  ;;  %v528_v45 = vld [vmem:[#allocation5 + $0x4b8] sm:$0xff] }
  0xa0   :  { %1699 = vmatprep.subr.bf16.mxu0 %v1698_v19  ;;  %1823 = vmatprep.subr.bf16.mxu1 %v1822_v46  ;;  %v505_v19 = vld [vmem:[#allocation5 + $0x400] sm:$0xff]  ;;  %v1842_v56 = vpack.c.bf16 %v528_v45, %v524_v44 }
  0xa1   :  { %v1708_v30 = vpack.c.bf16 %v509_v20, %v505_v19  ;;  %v1722_v19 = vpack.c.bf16 %v542_v9, %v538_v8  ;;  %v553_v44 = vld [vmem:[#allocation5 + $0x580] sm:$0xff] }
  0xa2   :  { %v557_v45 = vld [vmem:[#allocation5 + $0x5a0] sm:$0xff] }
  0xa3   :  { %1701 = vmatpush1.bf16.msra.mxu0 %v1700_v26  ;;  %1825 = vmatpush1.bf16.msra.mxu1 %v1824_v52  ;;  %v518_v26 = vld [vmem:[#allocation5 + $0x468] sm:$0xff]  ;;  %v525_v52 = vld [vmem:[#allocation5 + $0x4a0] sm:$0xff]  ;;  %v1732_v59 = vpack.c.bf16 %v557_v45, %v553_v44 }
  0xa4   :  { %1827 = vmatprep.subr.bf16.mxu1 %v1826_v54  ;;  %1703 = vmatprep.subr.bf16.mxu0 %v1702_v61  ;;  %v1710_v36 = vpack.c.bf16 %v518_v26, %v514_v24  ;;  %v532_v61 = vld [vmem:[#allocation5 + $0x4d8] sm:$0xff]  ;;  %v1716_v0 = vpack.c.bf16 %v525_v52, %v521_v51  ;;  %v562_v51 = vld [vmem:[#allocation5 + $0x5c8] sm:$0xff] }
  0xa5   :  { %v1846_v5 = vpack.c.bf16 %v536_v62, %v532_v61  ;;  %v548_v24 = vld [vmem:[#allocation5 + $0x558] sm:$0xff]  ;;  %v561_v61 = vld [vmem:[#allocation5 + $0x5c0] sm:$0xff]  ;;  %v594_v44 = vld [vmem:[#allocation5 + $0x6c8] sm:$0xff] }
  0xa6   :  { %v565_v62 = vld [vmem:[#allocation5 + $0x5e0] sm:$0xff]  ;;  %v598_v45 = vld [vmem:[#allocation5 + $0x6e8] sm:$0xff] }
  0xa7   :  { %1829 = vmatpush1.bf16.msra.mxu1 %v1828_v57  ;;  %1705 = vmatpush1.bf16.msra.mxu0 %v1704_v3  ;;  %v523_v57 = vld [vmem:[#allocation5 + $0x490] sm:$0xff]  ;;  %v533_v3 = vld [vmem:[#allocation5 + $0x4e0] sm:$0xff]  ;;  %v1736_v8 = vpack.c.bf16 %v565_v62, %v561_v61  ;;  %v606_v61 = vld [vmem:[#allocation5 + $0x728] sm:$0xff] }
  0xa8   :  { %1831 = vmatprep.subr.bf16.mxu1 %v1830_v2  ;;  %1707 = vmatprep.subr.bf16.mxu0 %v1706_v10  ;;  %v1844_v1 = vpack.c.bf16 %v527_v58, %v523_v57  ;;  %v529_v2 = vld [vmem:[#allocation5 + $0x4c0] sm:$0xff]  ;;  %v540_v10 = vld [vmem:[#allocation5 + $0x518] sm:$0xff] }
  0xa9   :  { %v1720_v11 = vpack.c.bf16 %v533_v3, %v529_v2  ;;  %v1850_v20 = vpack.c.bf16 %v544_v49, %v540_v10  ;;  %v568_v57 = vld [vmem:[#allocation5 + $0x5f8] sm:$0xff]  ;;  %v563_v2 = vld [vmem:[#allocation5 + $0x5d0] sm:$0xff]  ;;  %v569_v10 = vld [vmem:[#allocation5 + $0x600] sm:$0xff] }
  0xaa   :  { %v567_v3 = vld [vmem:[#allocation5 + $0x5f0] sm:$0xff]  ;;  %v573_v49 = vld [vmem:[#allocation5 + $0x620] sm:$0xff]  ;;  %v604_v62 = vld [vmem:[#allocation5 + $0x718] sm:$0xff] }
  0xab   :  { %1833 = vmatpush1.bf16.msra.mxu1 %v1832_v6  ;;  %v531_v6 = vld [vmem:[#allocation5 + $0x4d0] sm:$0xff]  ;;  %v1864_v9 = vpack.c.bf16 %v567_v3, %v563_v2  ;;  %v601_v3 = vld [vmem:[#allocation5 + $0x700] sm:$0xff] }
  0xac   :  { %1835 = vmatprep.subr.bf16.mxu1 %v1834_v53  ;;  %v209_v53 = vsub.s32 3, %v2178_v12 }
  0xae   :  { %v2197_v26 = vrot.slane %v2184_v14, %v209_v53 }
 0x13d   :  { %v281_v18 = vpop.f32.mrb[0].mxu0 }
 0x13e   :  { %v282_v21 = vadd.f32 %v281_v18, %v198_v16  ;;  %v283_v63 = vpop.f32.mrb[1].mxu0  ;;  %v541_v18 = vld [vmem:[#allocation5 + $0x520] sm:$0xff] }
 0x13f   :  { %v284_v25 = vadd.f32 %v283_v63, %v202_v17  ;;  %v543_v63 = vld [vmem:[#allocation5 + $0x530] sm:$0xff] }
 0x140   :  { %v369_v35 = vmax.f32 %v282_v21, 0.0  ;;  %v539_v21 = vld [vmem:[#allocation5 + $0x510] sm:$0xff] }
 0x141   :  { %v370_v29 = vmax.f32 %v284_v25, 0.0  ;;  %v287_v34 = vpop.f32.mrb[2].mxu0  ;;  %v552_v25 = vld [vmem:[#allocation5 + $0x578] sm:$0xff]  ;;  %v1852_v28 = vpack.c.bf16 %v543_v63, %v539_v21 }
 0x142   :  { %v288_v41 = vadd.f32 %v287_v34, %v198_v16  ;;  %v289_v42 = vpop.f32.mrb[3].mxu0  ;;  %v1848_v16 = vpack.c.bf16 %v535_v7, %v531_v6  ;;  %v1854_v32 = vpack.c.bf16 %v552_v25, %v548_v24  ;;  %v551_v34 = vld [vmem:[#allocation5 + $0x570] sm:$0xff]  ;;  %v572_v6 = vld [vmem:[#allocation5 + $0x618] sm:$0xff]  ;;  %v577_v24 = vld [vmem:[#allocation5 + $0x640] sm:$0xff] }
 0x143   :  { %719 = vmatprep.mubr.f32.mxu0 %v370_v29  ;;  %873 = vmatprep.mubr.f32.mxu1 %v370_v29  ;;  %v290_v46 = vadd.f32 %v289_v42, %v202_v17  ;;  %v537_v17 = vld [vmem:[#allocation5 + $0x500] sm:$0xff]  ;;  %v1856_v43 = vpack.c.bf16 %v551_v34, %v547_v33  ;;  %v576_v7 = vld [vmem:[#allocation5 + $0x638] sm:$0xff] }
 0x144   :  { %720 = vmatmul.mubr.f32.vlgmr.msra.gmra.mrb[4].mxu0 %v369_v35  ;;  %874 = vmatmul.mubr.f32.vlgmr.msra.gmra.mrb[4].mxu1 %v369_v35  ;;  %v373_v47 = vmax.f32 %v288_v41, 0.0  ;;  %v1724_v27 = vpack.c.bf16 %v541_v18, %v537_v17  ;;  %v545_v29 = vld [vmem:[#allocation5 + $0x540] sm:$0xff]  ;;  %v554_v35 = vld [vmem:[#allocation5 + $0x588] sm:$0xff]  ;;  %v571_v17 = vld [vmem:[#allocation5 + $0x610] sm:$0xff] }
 0x145   :  { %1709 = vmatpush1.bf16.msra.mxu0 %v1708_v30  ;;  %1837 = vmatpush1.bf16.msra.mxu1 %v1836_v31  ;;  %v374_v54 = vmax.f32 %v290_v46, 0.0  ;;  %v549_v30 = vld [vmem:[#allocation5 + $0x560] sm:$0xff]  ;;  %v1726_v31 = vpack.c.bf16 %v550_v23, %v546_v22  ;;  %v575_v18 = vld [vmem:[#allocation5 + $0x630] sm:$0xff]  ;;  %v580_v21 = vld [vmem:[#allocation5 + $0x658] sm:$0xff]  ;;  %v1740_v22 = vpack.c.bf16 %v573_v49, %v569_v10 }
 0x146   :  { %1711 = vmatprep.subr.bf16.mxu0 %v1710_v36  ;;  %1839 = vmatprep.subr.bf16.mxu1 %v1838_v37  ;;  %v2199_v36 = vpop.f32.mrb[0].mxu1  ;;  %v558_v37 = vld [vmem:[#allocation5 + $0x5a8] sm:$0xff]  ;;  %v1728_v42 = vpack.c.bf16 %v549_v30, %v545_v29  ;;  %v584_v63 = vld [vmem:[#allocation5 + $0x678] sm:$0xff]  ;;  %v1868_v23 = vpack.c.bf16 %v575_v18, %v571_v17  ;;  %v581_v25 = vld [vmem:[#allocation5 + $0x660] sm:$0xff] }
 0x147   :  { %725 = vmatprep.mubr.f32.mxu0 %v374_v54  ;;  %879 = vmatprep.mubr.f32.mxu1 %v374_v54  ;;  %v360_v40 = vpop.f32.mrb[1].mxu1  ;;  %v1730_v46 = vpack.c.bf16 %v558_v37, %v554_v35  ;;  %v579_v29 = vld [vmem:[#allocation5 + $0x650] sm:$0xff]  ;;  %v588_v33 = vld [vmem:[#allocation5 + $0x698] sm:$0xff]  ;;  %v1744_v35 = vpack.c.bf16 %v581_v25, %v577_v24  ;;  %v614_v10 = vld [vmem:[#allocation5 + $0x768] sm:$0xff] }
 0x148   :  { %726 = vmatmul.mubr.f32.gmra.mrb[6].mxu0 %v373_v47  ;;  %880 = vmatmul.mubr.f32.gmra.mrb[6].mxu1 %v373_v47  ;;  %v361_v41 = vadd.f32 %v360_v40, %v2197_v26  ;;  %v1858_v47 = vpack.c.bf16 %v560_v39, %v556_v38  ;;  %v2202_v54 = vpop.f32.mrb[2].mxu1  ;;  %v583_v30 = vld [vmem:[#allocation5 + $0x670] sm:$0xff]  ;;  %v592_v34 = vld [vmem:[#allocation5 + $0x6b8] sm:$0xff]  ;;  %v585_v38 = vld [vmem:[#allocation5 + $0x680] sm:$0xff] }
 0x149   :  { %1713 = vmatpush1.bf16.msra.mxu0 %v1712_v48  ;;  %1841 = vmatpush1.bf16.msra.mxu1 %v1840_v50  ;;  %v555_v48 = vld [vmem:[#allocation5 + $0x590] sm:$0xff]  ;;  %v2204_v58 = vpop.f32.mrb[3].mxu1  ;;  %v1872_v37 = vpack.c.bf16 %v583_v30, %v579_v29  ;;  %v589_v39 = vld [vmem:[#allocation5 + $0x6a0] sm:$0xff]  ;;  %v612_v49 = vld [vmem:[#allocation5 + $0x758] sm:$0xff] }
 0x14a   :  { %1715 = vmatprep.subr.bf16.mxu0 %v1714_v55  ;;  %1843 = vmatprep.subr.bf16.mxu1 %v1842_v56  ;;  %v559_v50 = vld [vmem:[#allocation5 + $0x5b0] sm:$0xff]  ;;  %v372_v52 = vmax.f32 %v361_v41, 0.0  ;;  %v566_v55 = vld [vmem:[#allocation5 + $0x5e8] sm:$0xff]  ;;  %v564_v56 = vld [vmem:[#allocation5 + $0x5d8] sm:$0xff]  ;;  %v1874_v41 = vpack.c.bf16 %v592_v34, %v588_v33 }
 0x14b   :  { %v1860_v60 = vpack.c.bf16 %v559_v50, %v555_v48  ;;  %v1748_v48 = vpack.c.bf16 %v589_v39, %v585_v38  ;;  %v609_v18 = vld [vmem:[#allocation5 + $0x740] sm:$0xff]  ;;  %v622_v24 = vld [vmem:[#allocation5 + $0x7a8] sm:$0xff]  ;;  %v620_v25 = vld [vmem:[#allocation5 + $0x798] sm:$0xff] }
 0x14c   :  { %796 = vmatprep.mubr.f32.mxu0 %v372_v52  ;;  %950 = vmatprep.mubr.f32.mxu1 %v372_v52  ;;  %v597_v52 = vld [vmem:[#allocation5 + $0x6e0] sm:$0xff]  ;;  %v626_v38 = vld [vmem:[#allocation5 + $0x7c8] sm:$0xff] }
 0x14d   :  { %1717 = vmatpush1.bf16.msra.mxu0 %v1716_v0  ;;  %1845 = vmatpush1.bf16.msra.mxu1 %v1844_v1  ;;  %v1734_v0 = vpack.c.bf16 %v566_v55, %v562_v51  ;;  %v1862_v1 = vpack.c.bf16 %v568_v57, %v564_v56  ;;  %v593_v51 = vld [vmem:[#allocation5 + $0x6c0] sm:$0xff]  ;;  %v1750_v55 = vpack.c.bf16 %v598_v45, %v594_v44  ;;  %v595_v57 = vld [vmem:[#allocation5 + $0x6d0] sm:$0xff]  ;;  %v630_v39 = vld [vmem:[#allocation5 + $0x7e8] sm:$0xff] }
 0x14e   :  { %1719 = vmatprep.subr.bf16.mxu0 %v1718_v4  ;;  %1847 = vmatprep.subr.bf16.mxu1 %v1846_v5  ;;  %v570_v4 = vld [vmem:[#allocation5 + $0x608] sm:$0xff]  ;;  %v617_v30 = vld [vmem:[#allocation5 + $0x780] sm:$0xff] }
 0x14f   :  { %v574_v5 = vld [vmem:[#allocation5 + $0x628] sm:$0xff]  ;;  %v625_v44 = vld [vmem:[#allocation5 + $0x7c0] sm:$0xff] }
 0x151   :  { %1721 = vmatpush1.bf16.msra.mxu0 %v1720_v11  ;;  %1849 = vmatpush1.bf16.msra.mxu1 %v1848_v16  ;;  %v1738_v11 = vpack.c.bf16 %v574_v5, %v570_v4  ;;  %v1866_v16 = vpack.c.bf16 %v576_v7, %v572_v6  ;;  %v605_v4 = vld [vmem:[#allocation5 + $0x720] sm:$0xff]  ;;  %v603_v7 = vld [vmem:[#allocation5 + $0x710] sm:$0xff] }
 0x152   :  { %1723 = vmatprep.subr.bf16.mxu0 %v1722_v19  ;;  %1851 = vmatprep.subr.bf16.mxu1 %v1850_v20  ;;  %v578_v19 = vld [vmem:[#allocation5 + $0x648] sm:$0xff] }
 0x153   :  { %v582_v20 = vld [vmem:[#allocation5 + $0x668] sm:$0xff] }
 0x155   :  { %1725 = vmatpush1.bf16.msra.mxu0 %v1724_v27  ;;  %1853 = vmatpush1.bf16.msra.mxu1 %v1852_v28  ;;  %v1742_v27 = vpack.c.bf16 %v582_v20, %v578_v19  ;;  %v1870_v28 = vpack.c.bf16 %v584_v63, %v580_v21  ;;  %v613_v19 = vld [vmem:[#allocation5 + $0x760] sm:$0xff]  ;;  %v611_v63 = vld [vmem:[#allocation5 + $0x750] sm:$0xff] }
 0x156   :  { %1727 = vmatprep.subr.bf16.mxu0 %v1726_v31  ;;  %1855 = vmatprep.subr.bf16.mxu1 %v1854_v32  ;;  %v586_v31 = vld [vmem:[#allocation5 + $0x688] sm:$0xff] }
 0x157   :  { %v590_v32 = vld [vmem:[#allocation5 + $0x6a8] sm:$0xff] }
 0x158   :  { %v1746_v40 = vpack.c.bf16 %v590_v32, %v586_v31  ;;  %v621_v31 = vld [vmem:[#allocation5 + $0x7a0] sm:$0xff]  ;;  %v205_v32 = vsub.s32 2, %v2178_v12 }
 0x159   :  { %1729 = vmatpush1.bf16.msra.mxu0 %v1728_v42  ;;  %1857 = vmatpush1.bf16.msra.mxu1 %v1856_v43  ;;  %v587_v42 = vld [vmem:[#allocation5 + $0x690] sm:$0xff] }
 0x15a   :  { %1731 = vmatprep.subr.bf16.mxu0 %v1730_v46  ;;  %1859 = vmatprep.subr.bf16.mxu1 %v1858_v47  ;;  %v591_v43 = vld [vmem:[#allocation5 + $0x6b0] sm:$0xff]  ;;  %v596_v46 = vld [vmem:[#allocation5 + $0x6d8] sm:$0xff]  ;;  %v206_v45 = vrot.slane %v2184_v14, %v205_v32 }
 0x15b   :  { %v600_v47 = vld [vmem:[#allocation5 + $0x6f8] sm:$0xff]  ;;  %v1876_v50 = vpack.c.bf16 %v591_v43, %v587_v42  ;;  %v1764_v42 = vpack.c.bf16 %v621_v31, %v617_v30  ;;  %v1128_v31 = vld [vmem:[%s2457_s5 + $0x50] sm:$0xff] }
 0x15c   :  { %v1878_v56 = vpack.c.bf16 %v600_v47, %v596_v46  ;;  %v1766_v46 = vpack.c.bf16 %v630_v39, %v626_v38  ;;  %v1145_v30 = vld [vmem:[%s2457_s5 + $0xd8] sm:$0xff]  ;;  %v1147_v38 = vld [vmem:[%s2457_s5 + $0xe8] sm:$0xff]  ;;  %v1130_v39 = vld [vmem:[%s2457_s5 + $0x60] sm:$0xff] }
 0x15d   :  { %1733 = vmatpush1.bf16.msra.mxu0 %v1732_v59  ;;  %1861 = vmatpush1.bf16.msra.mxu1 %v1860_v60  ;;  %v599_v59 = vld [vmem:[#allocation5 + $0x6f0] sm:$0xff]  ;;  %v602_v60 = vld [vmem:[#allocation5 + $0x708] sm:$0xff] }
 0x15e   :  { %1735 = vmatprep.subr.bf16.mxu0 %v1734_v0  ;;  %1863 = vmatprep.subr.bf16.mxu1 %v1862_v1  ;;  %v608_v0 = vld [vmem:[#allocation5 + $0x738] sm:$0xff]  ;;  %v1752_v1 = vpack.c.bf16 %v597_v52, %v593_v51  ;;  %v1880_v2 = vpack.c.bf16 %v599_v59, %v595_v57  ;;  %v1754_v5 = vpack.c.bf16 %v606_v61, %v602_v60  ;;  %v631_v51 = vld [vmem:[#allocation5 + $0x7f0] sm:$0xff] }
 0x15f   :  { %v1882_v6 = vpack.c.bf16 %v608_v0, %v604_v62  ;;  %v367_v52 = vadd.f32 %v2204_v58, %v2197_v26  ;;  %v359_v57 = vadd.f32 %v2199_v36, %v206_v45  ;;  %v365_v60 = vadd.f32 %v2202_v54, %v206_v45  ;;  %v1134_v36 = vld [vmem:[%s2457_s5 + $0x80] sm:$0xff]  ;;  %v1135_v58 = vld [vmem:[%s2457_s5 + $0x88] sm:$0xff] }
 0x160   :  { %v2076_v26 = vmov 0.0   ;;  %v1118_v54 = vld [vmem:[%s2457_s5] sm:$0xff]  ;;  %v1906_v62 = vpack.c.bf16 %v1135_v58, %v1134_v36  ;;  %v1119_v0 = vld [vmem:[%s2457_s5 + $0x8] sm:$0xff] }
 0x161   :  { %1737 = vmatpush1.bf16.msra.mxu0 %v1736_v8  ;;  %1865 = vmatpush1.bf16.msra.mxu1 %v1864_v9  ;;  %v607_v8 = vld [vmem:[#allocation5 + $0x730] sm:$0xff]  ;;  %v610_v9 = vld [vmem:[#allocation5 + $0x748] sm:$0xff]  ;;  %v376_v59 = vmax.f32 %v367_v52, 0.0  ;;  %v371_v14 = vmax.f32 %v359_v57, 0.0  ;;  %v375_v61 = vmax.f32 %v365_v60, 0.0 }
 0x162   :  { %1739 = vmatprep.subr.bf16.mxu0 %v1738_v11  ;;  %1867 = vmatprep.subr.bf16.mxu1 %v1866_v16  ;;  %v616_v11 = vld [vmem:[#allocation5 + $0x778] sm:$0xff]  ;;  %v1756_v16 = vpack.c.bf16 %v605_v4, %v601_v3  ;;  %v1884_v17 = vpack.c.bf16 %v607_v8, %v603_v7  ;;  %v1758_v20 = vpack.c.bf16 %v614_v10, %v610_v9  ;;  %v1120_v4 = vld [vmem:[%s2457_s5 + $0x10] sm:$0xff]  ;;  %v1138_v8 = vld [vmem:[%s2457_s5 + $0xa0] sm:$0xff] }
 0x163   :  { %v1886_v21 = vpack.c.bf16 %v616_v11, %v612_v49  ;;  %v1137_v3 = vld [vmem:[%s2457_s5 + $0x98] sm:$0xff]  ;;  %v1139_v9 = vld [vmem:[%s2457_s5 + $0xa8] sm:$0xff]  ;;  %v1122_v49 = vld [vmem:[%s2457_s5 + $0x20] sm:$0xff] }
 0x164   :  { %v1914_v10 = vpack.c.bf16 %v1139_v9, %v1138_v8  ;;  %v1123_v11 = vld [vmem:[%s2457_s5 + $0x28] sm:$0xff] }
 0x165   :  { %1741 = vmatpush1.bf16.msra.mxu0 %v1740_v22  ;;  %1869 = vmatpush1.bf16.msra.mxu1 %v1868_v23  ;;  %v615_v22 = vld [vmem:[#allocation5 + $0x770] sm:$0xff]  ;;  %v618_v23 = vld [vmem:[#allocation5 + $0x788] sm:$0xff] }
 0x166   :  { %1743 = vmatprep.subr.bf16.mxu0 %v1742_v27  ;;  %1871 = vmatprep.subr.bf16.mxu1 %v1870_v28  ;;  %v624_v27 = vld [vmem:[#allocation5 + $0x7b8] sm:$0xff]  ;;  %v1760_v28 = vpack.c.bf16 %v613_v19, %v609_v18  ;;  %v1888_v29 = vpack.c.bf16 %v615_v22, %v611_v63  ;;  %v1762_v33 = vpack.c.bf16 %v622_v24, %v618_v23  ;;  %v1124_v19 = vld [vmem:[%s2457_s5 + $0x30] sm:$0xff]  ;;  %v1142_v22 = vld [vmem:[%s2457_s5 + $0xc0] sm:$0xff] }
 0x167   :  { %v1890_v34 = vpack.c.bf16 %v624_v27, %v620_v25  ;;  %v1141_v18 = vld [vmem:[%s2457_s5 + $0xb8] sm:$0xff]  ;;  %v1143_v23 = vld [vmem:[%s2457_s5 + $0xc8] sm:$0xff]  ;;  %v1126_v24 = vld [vmem:[%s2457_s5 + $0x40] sm:$0xff] }
 0x168   :  { %v1922_v25 = vpack.c.bf16 %v1143_v23, %v1142_v22  ;;  %v1127_v27 = vld [vmem:[%s2457_s5 + $0x48] sm:$0xff]  ;;  %v1152_v23 = vld [vmem:[%s2457_s5 + $0x110] sm:$0xff] }
 0x169   :  { %1745 = vmatpush1.bf16.msra.mxu0 %v1744_v35  ;;  %1873 = vmatpush1.bf16.msra.mxu1 %v1872_v37  ;;  %v619_v35 = vld [vmem:[#allocation5 + $0x790] sm:$0xff] }
 0x16a   :  { %1747 = vmatprep.subr.bf16.mxu0 %v1746_v40  ;;  %1875 = vmatprep.subr.bf16.mxu1 %v1874_v41  ;;  %v623_v37 = vld [vmem:[#allocation5 + $0x7b0] sm:$0xff]  ;;  %v628_v40 = vld [vmem:[#allocation5 + $0x7d8] sm:$0xff] }
 0x16b   :  { %v632_v41 = vld [vmem:[#allocation5 + $0x7f8] sm:$0xff]  ;;  %v1892_v43 = vpack.c.bf16 %v623_v37, %v619_v35  ;;  %v1146_v37 = vld [vmem:[%s2457_s5 + $0xe0] sm:$0xff] }
 0x16c   :  { %v1894_v47 = vpack.c.bf16 %v632_v41, %v628_v40  ;;  %v1930_v40 = vpack.c.bf16 %v1147_v38, %v1146_v37  ;;  %v1131_v41 = vld [vmem:[%s2457_s5 + $0x68] sm:$0xff]  ;;  %v1156_v38 = vld [vmem:[%s2457_s5 + $0x130] sm:$0xff] }
 0x16d   :  { %1749 = vmatpush1.bf16.msra.mxu0 %v1748_v48  ;;  %1877 = vmatpush1.bf16.msra.mxu1 %v1876_v50  ;;  %v629_v48 = vld [vmem:[#allocation5 + $0x7e0] sm:$0xff]  ;;  %v627_v50 = vld [vmem:[#allocation5 + $0x7d0] sm:$0xff] }
 0x16e   :  { %1751 = vmatprep.subr.bf16.mxu0 %v1750_v55  ;;  %1879 = vmatprep.subr.bf16.mxu1 %v1878_v56  ;;  %v1768_v55 = vpack.c.bf16 %v629_v48, %v625_v44  ;;  %v1896_v56 = vpack.c.bf16 %v631_v51, %v627_v50  ;;  %v1149_v44 = vld [vmem:[%s2457_s5 + $0xf8] sm:$0xff] }
 0x171   :  { %1753 = vmatpush1.bf16.msra.mxu0 %v1752_v1  ;;  %1881 = vmatpush1.bf16.msra.mxu1 %v1880_v2  ;;  %v1908_v1 = vpack.c.bf16 %v1119_v0, %v1118_v54  ;;  %v1136_v2 = vld [vmem:[%s2457_s5 + $0x90] sm:$0xff] }
 0x172   :  { %1755 = vmatprep.subr.bf16.mxu0 %v1754_v5  ;;  %1883 = vmatprep.subr.bf16.mxu1 %v1882_v6  ;;  %v1121_v5 = vld [vmem:[%s2457_s5 + $0x18] sm:$0xff]  ;;  %v1910_v6 = vpack.c.bf16 %v1137_v3, %v1136_v2 }
 0x173   :  { %v1912_v7 = vpack.c.bf16 %v1121_v5, %v1120_v4 }
 0x175   :  { %1757 = vmatpush1.bf16.msra.mxu0 %v1756_v16  ;;  %1885 = vmatpush1.bf16.msra.mxu1 %v1884_v17  ;;  %v1916_v16 = vpack.c.bf16 %v1123_v11, %v1122_v49  ;;  %v1140_v17 = vld [vmem:[%s2457_s5 + $0xb0] sm:$0xff]  ;;  %v1166_v49 = vld [vmem:[%s2457_s5 + $0x180] sm:$0xff]  ;;  %v1167_v11 = vld [vmem:[%s2457_s5 + $0x188] sm:$0xff] }
 0x176   :  { %1759 = vmatprep.subr.bf16.mxu0 %v1758_v20  ;;  %1887 = vmatprep.subr.bf16.mxu1 %v1886_v21  ;;  %v1918_v20 = vpack.c.bf16 %v1141_v18, %v1140_v17  ;;  %v1125_v21 = vld [vmem:[%s2457_s5 + $0x38] sm:$0xff]  ;;  %v1938_v17 = vpack.c.bf16 %v1167_v11, %v1166_v49  ;;  %v1150_v18 = vld [vmem:[%s2457_s5 + $0x100] sm:$0xff] }
 0x177   :  { %v1920_v63 = vpack.c.bf16 %v1125_v21, %v1124_v19  ;;  %v1151_v19 = vld [vmem:[%s2457_s5 + $0x108] sm:$0xff]  ;;  %v1169_v21 = vld [vmem:[%s2457_s5 + $0x198] sm:$0xff] }
 0x179   :  { %1761 = vmatpush1.bf16.msra.mxu0 %v1760_v28  ;;  %1889 = vmatpush1.bf16.msra.mxu1 %v1888_v29  ;;  %v1924_v28 = vpack.c.bf16 %v1127_v27, %v1126_v24  ;;  %v1144_v29 = vld [vmem:[%s2457_s5 + $0xd0] sm:$0xff]  ;;  %v1153_v24 = vld [vmem:[%s2457_s5 + $0x118] sm:$0xff]  ;;  %v1171_v27 = vld [vmem:[%s2457_s5 + $0x1a8] sm:$0xff] }
 0x17a   :  { %1763 = vmatprep.subr.bf16.mxu0 %v1762_v33  ;;  %1891 = vmatprep.subr.bf16.mxu1 %v1890_v34  ;;  %v1926_v33 = vpack.c.bf16 %v1145_v30, %v1144_v29  ;;  %v1129_v34 = vld [vmem:[%s2457_s5 + $0x58] sm:$0xff]  ;;  %v1154_v30 = vld [vmem:[%s2457_s5 + $0x120] sm:$0xff] }
 0x17b   :  { %v1928_v35 = vpack.c.bf16 %v1129_v34, %v1128_v31  ;;  %v1155_v31 = vld [vmem:[%s2457_s5 + $0x128] sm:$0xff]  ;;  %v1173_v34 = vld [vmem:[%s2457_s5 + $0x1b8] sm:$0xff] }
 0x17d   :  { %1765 = vmatpush1.bf16.msra.mxu0 %v1764_v42  ;;  %1893 = vmatpush1.bf16.msra.mxu1 %v1892_v43  ;;  %v1932_v42 = vpack.c.bf16 %v1131_v41, %v1130_v39  ;;  %v1148_v43 = vld [vmem:[%s2457_s5 + $0xf0] sm:$0xff]  ;;  %v1157_v39 = vld [vmem:[%s2457_s5 + $0x138] sm:$0xff]  ;;  %v1175_v41 = vld [vmem:[%s2457_s5 + $0x1c8] sm:$0xff] }
 0x17e   :  { %1767 = vmatprep.subr.bf16.mxu0 %v1766_v46  ;;  %1895 = vmatprep.subr.bf16.mxu1 %v1894_v47  ;;  %v1934_v45 = vpack.c.bf16 %v1149_v44, %v1148_v43  ;;  %v633_v46 = vld [vmem:[%s2456_s4] sm:$0xf] }
 0x17f   :  { %v638_v47 = vrot.slane %v633_v46, %v197_v13  ;;  %v646_v48 = vrot.slane %v633_v46, %v205_v32  ;;  %v642_v52 = vrot.slane %v633_v46, %v201_v15  ;;  %v1158_v44 = vld [vmem:[%s2457_s5 + $0x140] sm:$0xff] }
 0x181   :  { %1769 = vmatpush1.bf16.msra.mxu0 %v1768_v55  ;;  %1897 = vmatpush1.bf16.msra.mxu1 %v1896_v56  ;;  %v650_v55 = vrot.slane %v633_v46, %v209_v53  ;;  %v1176_v46 = vld [vmem:[%s2457_s5 + $0x1d0] sm:$0xff] }
 0x182   :  { %1907 = vmatprep.subr.bf16.mxu0 %v1906_v62 }
 0x184   :  { %797 = vmatmul.mubr.f32.vlgmr.msra.gmra.mrb[4].mxu0 %v371_v14  ;;  %951 = vmatmul.mubr.f32.vlgmr.msra.gmra.mrb[4].mxu1 %v371_v14 }
 0x185   :  { %802 = vmatprep.mubr.f32.mxu0 %v376_v59  ;;  %956 = vmatprep.mubr.f32.mxu1 %v376_v59 }
 0x186   :  { %1909 = vmatpush3.bf16.msra.mxu0 %v1908_v1 }
 0x187   :  { %1911 = vmatprep.subr.bf16.mxu0 %v1910_v6 }
 0x188   :  { %803 = vmatmul.mubr.f32.gmra.mrb[6].mxu0 %v375_v61  ;;  %957 = vmatmul.mubr.f32.gmra.mrb[6].mxu1 %v375_v61 }
 0x189   :  { %1040 = vmatprep.mubr.f32.mxu1 %v2076_v26 }
 0x18a   :  { %1913 = vmatpush3.bf16.msra.mxu0 %v1912_v7 }
 0x18b   :  { %1915 = vmatprep.subr.bf16.mxu0 %v1914_v10 }
 0x18e   :  { %1917 = vmatpush3.bf16.msra.mxu0 %v1916_v16  ;;  %v971_v16 = vld [vmem:[%s2458_s6] sm:$0x3] }
 0x18f   :  { %1919 = vmatprep.subr.bf16.mxu0 %v1918_v20  ;;  %v1168_v20 = vld [vmem:[%s2457_s5 + $0x190] sm:$0xff] }
 0x190   :  { %v1942_v22 = vpack.c.bf16 %v1169_v21, %v1168_v20  ;;  %v1426_v21 = vld [vmem:[%s2460_s8] ss:$0 sm:$0xff] }
 0x192   :  { %1921 = vmatpush3.bf16.msra.mxu0 %v1920_v63  ;;  %v1940_v63 = vpack.c.bf16 %v1151_v19, %v1150_v18 }
 0x193   :  { %1923 = vmatprep.subr.bf16.mxu0 %v1922_v25  ;;  %v1170_v25 = vld [vmem:[%s2457_s5 + $0x1a0] sm:$0xff] }
 0x194   :  { %v1946_v29 = vpack.c.bf16 %v1171_v27, %v1170_v25 }
 0x196   :  { %1925 = vmatpush3.bf16.msra.mxu0 %v1924_v28  ;;  %v1944_v28 = vpack.c.bf16 %v1153_v24, %v1152_v23 }
 0x197   :  { %1927 = vmatprep.subr.bf16.mxu0 %v1926_v33  ;;  %v1172_v33 = vld [vmem:[%s2457_s5 + $0x1b0] sm:$0xff] }
 0x198   :  { %v1950_v37 = vpack.c.bf16 %v1173_v34, %v1172_v33 }
 0x19a   :  { %1929 = vmatpush3.bf16.msra.mxu0 %v1928_v35  ;;  %v1948_v35 = vpack.c.bf16 %v1155_v31, %v1154_v30 }
 0x19b   :  { %1931 = vmatprep.subr.bf16.mxu0 %v1930_v40  ;;  %v1174_v40 = vld [vmem:[%s2457_s5 + $0x1c0] sm:$0xff] }
 0x19c   :  { %v1954_v43 = vpack.c.bf16 %v1175_v41, %v1174_v40 }
 0x19e   :  { %1933 = vmatpush3.bf16.msra.mxu0 %v1932_v42  ;;  %v1952_v42 = vpack.c.bf16 %v1157_v39, %v1156_v38 }
 0x19f   :  { %1935 = vmatprep.subr.bf16.mxu0 %v1934_v45  ;;  %v1159_v45 = vld [vmem:[%s2457_s5 + $0x148] sm:$0xff] }
 0x257   :  { %v798_v50 = vpop.f32.mrb[4].mxu0  ;;  %v952_v51 = vpop.f32.mrb[4].mxu1 }
 0x258   :  { %v800_v56 = vpop.f32.mrb[5].mxu0  ;;  %v954_v57 = vpop.f32.mrb[5].mxu1  ;;  %v1976_v59 = vadd.f32 %v798_v50, %v638_v47  ;;  %v1980_v14 = vadd.f32 %v952_v51, %v646_v48  ;;  %v1160_v51 = vld [vmem:[%s2457_s5 + $0x150] sm:$0xff] }
 0x259   :  { %v1977_v60 = vadd.f32 %v800_v56, %v642_v52  ;;  %v1981_v61 = vadd.f32 %v954_v57, %v650_v55  ;;  %v1179_v56 = vld [vmem:[%s2457_s5 + $0x1e8] sm:$0xff] }
 0x25a   :  { %v963_v2 = vmax.f32 %v1976_v59, 0.0  ;;  %v965_v3 = vmax.f32 %v1980_v14, 0.0  ;;  %v1162_v14 = vld [vmem:[%s2457_s5 + $0x160] sm:$0xff] }
 0x25b   :  { %v804_v36 = vpop.f32.mrb[6].mxu0  ;;  %v958_v58 = vpop.f32.mrb[6].mxu1  ;;  %v964_v12 = vmax.f32 %v1977_v60, 0.0  ;;  %v966_v53 = vmax.f32 %v1981_v61, 0.0  ;;  %v1163_v60 = vld [vmem:[%s2457_s5 + $0x168] sm:$0xff] }
 0x25c   :  { %v1978_v13 = vadd.f32 %v804_v36, %v638_v47  ;;  %v1982_v54 = vadd.f32 %v958_v58, %v646_v48  ;;  %v806_v62 = vpop.f32.mrb[7].mxu0  ;;  %v960_v32 = vpop.f32.mrb[7].mxu1  ;;  %v1177_v47 = vld [vmem:[%s2457_s5 + $0x1d8] sm:$0xff]  ;;  %v1956_v48 = vpack.c.bf16 %v1159_v45, %v1158_v44  ;;  %v1964_v61 = vpack.c.bf16 %v1163_v60, %v1162_v14  ;;  %v1132_v36 = vld [vmem:[%s2457_s5 + $0x70] sm:$0xff] }
 0x25d   :  { %v1979_v0 = vadd.f32 %v806_v62, %v642_v52  ;;  %v1983_v1 = vadd.f32 %v960_v32, %v650_v55  ;;  %v1958_v50 = vpack.c.bf16 %v1177_v47, %v1176_v46  ;;  %v1161_v52 = vld [vmem:[%s2457_s5 + $0x158] sm:$0xff]  ;;  %v1178_v55 = vld [vmem:[%s2457_s5 + $0x1e0] sm:$0xff] }
 0x25e   :  { %v967_v15 = vmax.f32 %v1978_v13, 0.0  ;;  %v969_v4 = vmax.f32 %v1982_v54, 0.0  ;;  %v1960_v57 = vpack.c.bf16 %v1161_v52, %v1160_v51  ;;  %v1962_v59 = vpack.c.bf16 %v1179_v56, %v1178_v55  ;;  %v1133_v58 = vld [vmem:[%s2457_s5 + $0x78] sm:$0xff]  ;;  %v1180_v54 = vld [vmem:[%s2457_s5 + $0x1f0] sm:$0xff] }
 0x25f   :  { %v968_v5 = vmax.f32 %v1979_v0, 0.0  ;;  %v970_v6 = vmax.f32 %v1983_v1, 0.0  ;;  %v1936_v13 = vpack.c.bf16 %v1133_v58, %v1132_v36  ;;  %v1181_v62 = vld [vmem:[%s2457_s5 + $0x1f8] sm:$0xff]  ;;  %v1164_v0 = vld [vmem:[%s2457_s5 + $0x170] sm:$0xff] }
 0x260   :  { %v1900_v7 = vpack.c.bf16 %v967_v15, %v963_v2  ;;  %v1904_v8 = vpack.c.bf16 %v969_v4, %v965_v3  ;;  %v1966_v32 = vpack.c.bf16 %v1181_v62, %v1180_v54  ;;  %v1165_v1 = vld [vmem:[%s2457_s5 + $0x178] sm:$0xff] }
 0x261   :  { %v1898_v9 = vpack.c.bf16 %v968_v5, %v964_v12  ;;  %v1902_v10 = vpack.c.bf16 %v970_v6, %v966_v53  ;;  %1937 = vmatpush3.bf16.msra.mxu0 %v1936_v13  ;;  %v1968_v2 = vpack.c.bf16 %v1165_v1, %v1164_v0  ;;  %v1322_v53 = vld [vmem:[%s2459_s7] sm:$0xff]  ;;  %v1323_v5 = vld [vmem:[%s2459_s7 + $0x8] sm:$0xff]  ;;  %v2077_v6 = vmov 0.0|0.0  }
 0x262   :  { %1970 = vmatprep.subr.bf16.mxu0 %v2077_v6 }
 0x263   :  { %1899 = vmatprep.subr.bf16.mxu1 %v1898_v9  ;;  %v1325_v9 = vld [vmem:[%s2459_s7 + $0x18] sm:$0xff] }
 0x264   :  { %1901 = vmatpush1.bf16.msra.mxu1 %v1900_v7  ;;  %v1971_v7 = vpack.c.bf16 %v1323_v5, %v1322_v53 }
 0x265   :  { %1903 = vmatprep.subr.bf16.mxu1 %v1902_v10 }
 0x267   :  { %1424 = vmatmul.mubr.msk.f32.vlgmr.msra.gmra.mrb[8].mxu1 %vm972_vm0, %v971_v16 }
 0x268   :  { %1905 = vmatpush1.bf16.msra.mxu1 %v1904_v8  ;;  %1111 = vmatprep.mubr.f32.mxu1 %v2076_v26  ;;  %v1324_v8 = vld [vmem:[%s2459_s7 + $0x10] sm:$0xff]  ;;  %s1414_s7 = sshll.u32 %s2079_s30, 4  ;;  %s1415_s7 = int_to_ptr.vmem [resolvable:$true] %s1414_s7 }
 0x269   :  { %1939 = vmatprep.subr.bf16.mxu1 %v1938_v17  ;;  %v1974_v10 = vpack.c.bf16 %v1325_v9, %v1324_v8  ;;  %s2044_s11 = scalar_lea.vmem %s1415_s7, 32  ;;  %p2049_p3 = scmp.lt.s32.totalorder %s1415_s7, %s1415_s7 }
 0x26a   :  { %p2045_p2 = scmp.ne.s32.totalorder %s1415_s7, %s2044_s11  ;;  %p2050_p4 = scmp.lt.s32.totalorder %s2044_s11, %s2044_s11 }
 0x26b   :  { %1425 = vmatmul.mubr.msk.f32.vlgmr.msra.gmra.mrb[10].mxu1 %vm972_vm0, %v971_v16 }
 0x26c   :  { %1941 = vmatpush3.bf16.msra.mxu1 %v1940_v63  ;;  %p2051_p5 = por %p2050_p4, %p2049_p3 }
 0x26d   :  { %1943 = vmatprep.subr.bf16.mxu1 %v1942_v22 }
 0x26e   :  { %p2052_p6 = pnand %p2051_p5, %p2045_p2 }
 0x270   :  { %1945 = vmatpush3.bf16.msra.mxu1 %v1944_v28 }
 0x271   :  { %1947 = vmatprep.subr.bf16.mxu1 %v1946_v29 }
 0x274   :  { %1949 = vmatpush3.bf16.msra.mxu1 %v1948_v35 }
 0x275   :  { %1951 = vmatprep.subr.bf16.mxu1 %v1950_v37 }
 0x278   :  { %1953 = vmatpush3.bf16.msra.mxu1 %v1952_v42 }
 0x279   :  { %1955 = vmatprep.subr.bf16.mxu1 %v1954_v43 }
 0x27c   :  { %1957 = vmatpush3.bf16.msra.mxu1 %v1956_v48 }
 0x27d   :  { %1959 = vmatprep.subr.bf16.mxu1 %v1958_v50 }
 0x280   :  { %1961 = vmatpush3.bf16.msra.mxu1 %v1960_v57 }
 0x281   :  { %1963 = vmatprep.subr.bf16.mxu1 %v1962_v59 }
 0x284   :  { %1965 = vmatpush3.bf16.msra.mxu1 %v1964_v61 }
 0x285   :  { %1967 = vmatprep.subr.bf16.mxu1 %v1966_v32 }
 0x288   :  { %1969 = vmatpush3.bf16.msra.mxu1 %v1968_v2 }
 0x33a   :  { %v1042_v3 = vpop.f32.mrb[8].mxu1 }
 0x33b   :  { %v1044_v15 = vpop.f32.mrb[9].mxu1 }
 0x33c   :  { %1246 = vmatprep.mubr.f32.mxu0 %v1044_v15 }
 0x33d   :  { %1247 = vmatmul.mubr.f32.vlgmr.msra.gmra.mrb[8].mxu0 %v1042_v3 }
 0x33e   :  { %v1113_v4 = vpop.f32.mrb[10].mxu1  ;;  %1972 = vmatpush3.bf16.msra.mxu0 %v1971_v7  ;;  %1511 = vmatprep.mubr.msk.f32.mxu0 %vm2078_vm1, %v2076_v26 }
 0x33f   :  { %v1115_v12 = vpop.f32.mrb[11].mxu1  ;;  %1973 = vmatprep.subr.bf16.mxu0 %v2077_v6 }
 0x340   :  { %1316 = vmatprep.mubr.f32.mxu1 %v1115_v12 }
 0x341   :  { %1317 = vmatmul.mubr.f32.vlgmr.msra.gmra.mrb[12].mxu1 %v1113_v4 }
 0x342   :  { %1975 = vmatpush3.bf16.msra.mxu0 %v1974_v10 }
 0x410   :  { %v1460_v49 = vpop.f32.mrb[8].mxu0 }
 0x411   :  { %v1461_v11 = vpop.f32.mrb[9].mxu0 }
 0x412   :  { %v1462_v16 = vadd.f32 %v1461_v11, %v1460_v49 }
 0x414   :  { %v1495_v17 = vpop.f32.mrb[12].mxu1 }
 0x415   :  { %v1496_v18 = vpop.f32.mrb[13].mxu1 }
 0x416   :  { %v1497_v19 = vadd.f32 %v1496_v18, %v1495_v17 }
 0x418   :  { %v1319_v20 = vadd.f32 %v1497_v19, %v1462_v16 }
 0x41a   :  { %1512 = vmatmul.mubr.msk.f32.vlgmr.msra.gmra.mrb[10].mxu0 %vm1333_vm2, %v1319_v20 }
 0x4ed   :  { %v1403_v63 = vpop.f32.mrb[10].mxu0 }
 0x4ee   :  { %v1404_v22 = vadd.f32 %v1426_v21, %v1403_v63  ;;  %v1513_v23 = vpop.f32.mrb[11].mxu0 }
 0x4f0   :  { %1407 = vst [vmem:[#allocation7] sm:$0x3] %v1404_v22 }
 0x4f1   :  { %2055 = shalt.err (!%p2052_p6)
}
 0x4f2   :  { %s2056_s1 = scalar_lea.hbm %s2461_s9, 32 }
 0x4f3   :  { %p2057_p7 = scmp.ne.s32.totalorder %s2461_s9, %s2056_s1  ;;  %p2060_p8 = scmp.lt.u32.totalorder %s2056_s1, %s2461_s9 }
 0x4f5   :  { %p2062_p9 = pnand %p2060_p8, %p2057_p7 }
 0x4f7   :  { %2065 = shalt.err (!%p2062_p9)
}
 0x4f8   :  { %1417 = dma.vmem_to_hbm [thread:$0]  %s1415_s7, 32, %s2461_s9, [#allocation4]  }
 0x4f9   :  { %2070 = dma.done.wait [#allocation4], 32  }
 0x4fa   :  { %2071 = vsyncadd [#allocation4], 4294967264 }
 0x4fb   :  { %1421 = vsyncpa [#allocation3], 1 }
 0x4fc   :  { %1422 = vsyncpa [#allocation6], 1 }
 0x4fd   :  { %1423 = vsyncpa [#allocation4], 1 }

</bundles_post_ra>
